<compile_context>
chip_gen: v5e
topology: v5e:2x2
jax: 0.10.0
libtpu: 0.0.40
codegen_flags: <defaults>
</compile_context>

<pallas_src>
import functools

import jax
import jax.numpy as jnp
from jax import lax
from jax.experimental import pallas as pl
from jax.experimental.pallas import tpu as pltpu

NEG_SLOPE = 0.01  # torch.nn.LeakyReLU default


def _paret_kernel(xq_ref, xk_ref, dg_ref,
                  wq_ref, bq_ref,
                  wk_ref, bk_ref,
                  wv_ref, bv_ref,
                  wr_ref, br_ref,
                  o_ref,
                  q_scr, acc_scr):
    kv = pl.program_id(1)

    # ---- init: Q projection for this q-tile + zero the ret accumulator --------
    @pl.when(kv == 0)
    def _():
        xq = xq_ref[...]                                               # (TQ, in_dim)
        q_scr[...] = (jnp.dot(xq, wq_ref[...],
                              preferred_element_type=jnp.float32)
                      + bq_ref[...])
        acc_scr[...] = jnp.zeros_like(acc_scr)

    # ---- per kv-tile: K/V projections, masked scores, accumulate ret ----------
    xk = xk_ref[...]                                                   # (TK, in_dim)
    k = jnp.dot(xk, wk_ref[...], preferred_element_type=jnp.float32) + bk_ref[...]
    v = jnp.dot(xk, wv_ref[...], preferred_element_type=jnp.float32) + bv_ref[...]

    # scores (TQ, TK) = Q @ K^T, contraction expressed without a transposed temp
    s = lax.dot_general(q_scr[...], k, (((1,), (1,)), ((), ())),
                        preferred_element_type=jnp.float32)
    acc_scr[...] += jnp.dot(dg_ref[...] * s, v,
                            preferred_element_type=jnp.float32)

    # ---- finalize: output projection + bias + LeakyReLU, single store ---------
    @pl.when(kv == pl.num_programs(1) - 1)
    def _():
        y = (jnp.dot(acc_scr[...], wr_ref[...],
                     preferred_element_type=jnp.float32)
             + br_ref[...])
        o_ref[...] = jnp.where(y >= 0.0, y, NEG_SLOPE * y)


def _choose_tile(T):
    for t in (256, 128):
        if T % t == 0:
            return t
    return T  # small T: a single full-extent tile (allowed by BlockSpec rules)


def _vmem_limit_bytes(TQ, TK, in_dim, inter_dim, out_dim):
    f32 = 4
    io_tiles = 2 * (TQ * in_dim + TK * in_dim + TQ * TK + TQ * out_dim)     # 2x buffered
    weights = 2 * (3 * in_dim * inter_dim + inter_dim * out_dim
                   + 3 * inter_dim + out_dim)
    scratch = 2 * TQ * inter_dim
    est = f32 * (io_tiles + weights + scratch)
    return int(min(max(2 * est + (2 << 20), 4 << 20), 60 << 20))            # v7x-safe cap


@functools.partial(jax.jit, static_argnames=())
def parallel_retention_kernel(x2d, d_gamma, params):
    """x2d: (T, in_dim); d_gamma: (T, T).  Returns (T, out_dim) float32."""
    T, in_dim = x2d.shape
    wq, bq, wk, bk, wv, bv, wr, br = params
    inter_dim = wq.shape[1]
    out_dim = wr.shape[1]

    TQ = _choose_tile(T)
    TK = _choose_tile(T)
    nq, nk = T // TQ, T // TK

    def const_spec(shape):
        return pl.BlockSpec(shape, lambda i, j: tuple(0 for _ in shape))

    in_specs = [
        pl.BlockSpec((TQ, in_dim), lambda i, j: (i, 0)),     # x for Q projection
        pl.BlockSpec((TK, in_dim), lambda i, j: (j, 0)),     # x for K/V projections
        pl.BlockSpec((TQ, TK), lambda i, j: (i, j)),         # d_gamma tile
        const_spec(wq.shape), const_spec(bq.shape),
        const_spec(wk.shape), const_spec(bk.shape),
        const_spec(wv.shape), const_spec(bv.shape),
        const_spec(wr.shape), const_spec(br.shape),
    ]
    out_spec = pl.BlockSpec((TQ, out_dim), lambda i, j: (i, 0))

    grid_spec = pltpu.PrefetchScalarGridSpec(
        num_scalar_prefetch=0,
        grid=(nq, nk),
        in_specs=in_specs,
        out_specs=out_spec,
        scratch_shapes=[
            pltpu.VMEM((TQ, inter_dim), jnp.float32),   # Q for current q-tile
            pltpu.VMEM((TQ, inter_dim), jnp.float32),   # ret accumulator
        ],
    )

    return pl.pallas_call(
        _paret_kernel,
        out_shape=jax.ShapeDtypeStruct((T, out_dim), jnp.float32),
        grid_spec=grid_spec,
        compiler_params=pltpu.CompilerParams(
            dimension_semantics=("parallel", "arbitrary"),
            vmem_limit_bytes=_vmem_limit_bytes(TQ, TK, in_dim, inter_dim, out_dim),
        ),
    )(x2d, x2d, d_gamma, wq, bq, wk, bk, wv, bv, wr, br)


def parallel_retention_forward(x, d_gamma, params, time_dim):
    """Mirrors ParallelRetention.forward.

    x: (feat, num_node, time_dim); in_dim must equal feat * num_node.
    d_gamma: (time_dim, time_dim).
    """
    num_node = x.shape[1]
    # torch: x.permute(2, 1, 0).contiguous().view(time_dim, -1)
    x2d = jnp.transpose(x, (2, 1, 0)).reshape(time_dim, -1)
    y = parallel_retention_kernel(x2d, d_gamma, params)      # (time_dim, out_dim)
    return y.reshape(num_node, -1)                            # torch: x.view(num_node, -1)


def init_params(key, in_dim, inter_dim, out_dim):
    ks = jax.random.split(key, 8)
    s_in = 1.0 / jnp.sqrt(in_dim)
    s_int = 1.0 / jnp.sqrt(inter_dim)
    # weights stored as (in_features, out_features) = torch_weight.T
    wq = jax.random.uniform(ks[0], (in_dim, inter_dim), jnp.float32, -s_in, s_in)
    bq = jax.random.uniform(ks[1], (1, inter_dim), jnp.float32, -s_in, s_in)
    wk = jax.random.uniform(ks[2], (in_dim, inter_dim), jnp.float32, -s_in, s_in)
    bk = jax.random.uniform(ks[3], (1, inter_dim), jnp.float32, -s_in, s_in)
    wv = jax.random.uniform(ks[4], (in_dim, inter_dim), jnp.float32, -s_in, s_in)
    bv = jax.random.uniform(ks[5], (1, inter_dim), jnp.float32, -s_in, s_in)
    wr = jax.random.uniform(ks[6], (inter_dim, out_dim), jnp.float32, -s_int, s_int)
    br = jax.random.uniform(ks[7], (1, out_dim), jnp.float32, -s_int, s_int)
    return (wq, bq, wk, bk, wv, bv, wr, br)


def _reference(x, d_gamma, params, time_dim):
    """Pure-JAX reference mirroring the torch code line by line."""
    wq, bq, wk, bk, wv, bv, wr, br = params
    num_node = x.shape[1]
    xr = jnp.transpose(x, (2, 1, 0)).reshape(time_dim, -1)
    q = xr @ wq + bq
    k = xr @ wk + bk
    v = xr @ wv + bv
    x0 = q @ k.T
    ret = (d_gamma * x0) @ v
    y = ret @ wr + br
    y = jnp.where(y >= 0.0, y, NEG_SLOPE * y)
    return y.reshape(num_node, -1)


if __name__ == "__main__":
    # x: (feat, num_node, time_dim); in_dim = feat * num_node
    feat, num_node, time_dim = 4, 8, 256
    in_dim = feat * num_node          # 32
    inter_dim = 128                   # lane-dense feature dims
    out_dim = 128                     # time_dim*out_dim divisible by num_node

    key = jax.random.PRNGKey(0)
    kx, kg, kp = jax.random.split(key, 3)

    x = jax.random.normal(kx, (feat, num_node, time_dim), jnp.float32)

    # decay matrix d_gamma: lower-triangular gamma^(n-m) retention mask
    gamma = 0.9
    idx = jnp.arange(time_dim)
    d_gamma = jnp.where(idx[:, None] >= idx[None, :],
                        gamma ** (idx[:, None] - idx[None, :]).astype(jnp.float32),
                        0.0).astype(jnp.float32)

    params = init_params(kp, in_dim, inter_dim, out_dim)

    out = parallel_retention_forward(x, d_gamma, params, time_dim)
    out = jax.block_until_ready(out)

    ref = _reference(x, d_gamma, params, time_dim)
    assert out.shape == (num_node, time_dim * out_dim // num_node), out.shape
    assert jnp.allclose(out, ref, atol=1e-3, rtol=1e-3), float(jnp.max(jnp.abs(out - ref)))

    print("KERNEL_OK")
</pallas_src>

<mosaic_0001>
module attributes {stable_mosaic.version = 11 : i64} {
  func.func @_paret_kernel(%arg0: i32, %arg1: i32, %arg2: memref<256x32xf32, #tpu.memory_space<vmem>>, %arg3: memref<256x32xf32, #tpu.memory_space<vmem>>, %arg4: memref<256x256xf32, #tpu.memory_space<vmem>>, %arg5: memref<32x128xf32, #tpu.memory_space<vmem>>, %arg6: memref<1x128xf32, #tpu.memory_space<vmem>>, %arg7: memref<32x128xf32, #tpu.memory_space<vmem>>, %arg8: memref<1x128xf32, #tpu.memory_space<vmem>>, %arg9: memref<32x128xf32, #tpu.memory_space<vmem>>, %arg10: memref<1x128xf32, #tpu.memory_space<vmem>>, %arg11: memref<128x128xf32, #tpu.memory_space<vmem>>, %arg12: memref<1x128xf32, #tpu.memory_space<vmem>>, %arg13: memref<256x128xf32, #tpu.memory_space<vmem>>, %arg14: memref<256x128xf32, #tpu.memory_space<vmem>>, %arg15: memref<256x128xf32, #tpu.memory_space<vmem>>) attributes {dimension_semantics = [#tpu.dimension_semantics<parallel>, #tpu.dimension_semantics<arbitrary>], iteration_bounds = array<i64: 1, 1>, scalar_prefetch = 0 : i64, scratch_operands = 2 : i64, tpu.core_type = #tpu.core_type<tc>, window_params = [{transform_indices = @transform_0, window_bounds = array<i64: 256, 32>}, {transform_indices = @transform_1, window_bounds = array<i64: 256, 32>}, {transform_indices = @transform_2, window_bounds = array<i64: 256, 256>}, {pipeline_mode = #tpu.pipeline_mode<synchronous>, transform_indices = @transform_3, window_bounds = array<i64: 32, 128>}, {pipeline_mode = #tpu.pipeline_mode<synchronous>, transform_indices = @transform_4, window_bounds = array<i64: 1, 128>}, {pipeline_mode = #tpu.pipeline_mode<synchronous>, transform_indices = @transform_5, window_bounds = array<i64: 32, 128>}, {pipeline_mode = #tpu.pipeline_mode<synchronous>, transform_indices = @transform_6, window_bounds = array<i64: 1, 128>}, {pipeline_mode = #tpu.pipeline_mode<synchronous>, transform_indices = @transform_7, window_bounds = array<i64: 32, 128>}, {pipeline_mode = #tpu.pipeline_mode<synchronous>, transform_indices = @transform_8, window_bounds = array<i64: 1, 128>}, {pipeline_mode = #tpu.pipeline_mode<synchronous>, transform_indices = @transform_9, window_bounds = array<i64: 128, 128>}, {pipeline_mode = #tpu.pipeline_mode<synchronous>, transform_indices = @transform_10, window_bounds = array<i64: 1, 128>}, {transform_indices = @transform_11, window_bounds = array<i64: 256, 128>}]} {
    %c0_i32 = arith.constant 0 : i32
    %0 = arith.cmpi eq, %arg1, %c0_i32 : i32
    %1 = arith.extui %0 : i1 to i32
    %c0_i32_0 = arith.constant 0 : i32
    %2 = arith.cmpi ne, %1, %c0_i32_0 : i32
    scf.if %2 {
      %c0_23 = arith.constant 0 : index
      %c0_24 = arith.constant 0 : index
      %25 = vector.load %arg2[%c0_23, %c0_24] : memref<256x32xf32, #tpu.memory_space<vmem>>, vector<256x32xf32>
      %c0_25 = arith.constant 0 : index
      %c0_26 = arith.constant 0 : index
      %26 = vector.load %arg5[%c0_25, %c0_26] : memref<32x128xf32, #tpu.memory_space<vmem>>, vector<32x128xf32>
      %cst_27 = arith.constant dense<0.000000e+00> : vector<256x128xf32>
      %27 = tpu.matmul %25, %26, %cst_27 {dimension_numbers = #tpu.dot_dimension_numbers<[1], [0], [0], [1], [0, 0, 1, 1], [], []>} : vector<256x32xf32>, vector<32x128xf32>, vector<256x128xf32> -> vector<256x128xf32>
      %c0_28 = arith.constant 0 : index
      %c0_29 = arith.constant 0 : index
      %28 = vector.load %arg6[%c0_28, %c0_29] : memref<1x128xf32, #tpu.memory_space<vmem>>, vector<1x128xf32>
      %29 = vector.broadcast %28 : vector<1x128xf32> to vector<256x128xf32>
      %30 = arith.addf %27, %29 : vector<256x128xf32>
      %c0_30 = arith.constant 0 : index
      %c0_31 = arith.constant 0 : index
      %31 = vector.load %arg14[%c0_30, %c0_31] : memref<256x128xf32, #tpu.memory_space<vmem>>, vector<256x128xf32>
      tpu.vector_store %arg14[%c0_30, %c0_31], %30 {strides = array<i32>} : memref<256x128xf32, #tpu.memory_space<vmem>>, vector<256x128xf32>,
      %cst_32 = arith.constant 0.000000e+00 : f32
      %32 = vector.broadcast %cst_32 : f32 to vector<256x128xf32>
      %c0_33 = arith.constant 0 : index
      %c0_34 = arith.constant 0 : index
      %33 = vector.load %arg15[%c0_33, %c0_34] : memref<256x128xf32, #tpu.memory_space<vmem>>, vector<256x128xf32>
      tpu.vector_store %arg15[%c0_33, %c0_34], %32 {strides = array<i32>} : memref<256x128xf32, #tpu.memory_space<vmem>>, vector<256x128xf32>,
    } else {
    }
    %c0 = arith.constant 0 : index
    %c0_1 = arith.constant 0 : index
    %3 = vector.load %arg3[%c0, %c0_1] : memref<256x32xf32, #tpu.memory_space<vmem>>, vector<256x32xf32>
    %c0_2 = arith.constant 0 : index
    %c0_3 = arith.constant 0 : index
    %4 = vector.load %arg7[%c0_2, %c0_3] : memref<32x128xf32, #tpu.memory_space<vmem>>, vector<32x128xf32>
    %cst = arith.constant dense<0.000000e+00> : vector<256x128xf32>
    %5 = tpu.matmul %3, %4, %cst {dimension_numbers = #tpu.dot_dimension_numbers<[1], [0], [0], [1], [0, 0, 1, 1], [], []>} : vector<256x32xf32>, vector<32x128xf32>, vector<256x128xf32> -> vector<256x128xf32>
    %c0_4 = arith.constant 0 : index
    %c0_5 = arith.constant 0 : index
    %6 = vector.load %arg8[%c0_4, %c0_5] : memref<1x128xf32, #tpu.memory_space<vmem>>, vector<1x128xf32>
    %7 = vector.broadcast %6 : vector<1x128xf32> to vector<256x128xf32>
    %8 = arith.addf %5, %7 : vector<256x128xf32>
    %c0_6 = arith.constant 0 : index
    %c0_7 = arith.constant 0 : index
    %9 = vector.load %arg9[%c0_6, %c0_7] : memref<32x128xf32, #tpu.memory_space<vmem>>, vector<32x128xf32>
    %cst_8 = arith.constant dense<0.000000e+00> : vector<256x128xf32>
    %10 = tpu.matmul %3, %9, %cst_8 {dimension_numbers = #tpu.dot_dimension_numbers<[1], [0], [0], [1], [0, 0, 1, 1], [], []>} : vector<256x32xf32>, vector<32x128xf32>, vector<256x128xf32> -> vector<256x128xf32>
    %c0_9 = arith.constant 0 : index
    %c0_10 = arith.constant 0 : index
    %11 = vector.load %arg10[%c0_9, %c0_10] : memref<1x128xf32, #tpu.memory_space<vmem>>, vector<1x128xf32>
    %12 = vector.broadcast %11 : vector<1x128xf32> to vector<256x128xf32>
    %13 = arith.addf %10, %12 : vector<256x128xf32>
    %c0_11 = arith.constant 0 : index
    %c0_12 = arith.constant 0 : index
    %14 = vector.load %arg14[%c0_11, %c0_12] : memref<256x128xf32, #tpu.memory_space<vmem>>, vector<256x128xf32>
    %cst_13 = arith.constant dense<0.000000e+00> : vector<256x256xf32>
    %15 = tpu.matmul %14, %8, %cst_13 {dimension_numbers = #tpu.dot_dimension_numbers<[1], [1], [0], [0], [0, 0, 1, 0], [], []>} : vector<256x128xf32>, vector<256x128xf32>, vector<256x256xf32> -> vector<256x256xf32>
    %c0_14 = arith.constant 0 : index
    %c0_15 = arith.constant 0 : index
    %16 = vector.load %arg15[%c0_14, %c0_15] : memref<256x128xf32, #tpu.memory_space<vmem>>, vector<256x128xf32>
    %c0_16 = arith.constant 0 : index
    %c0_17 = arith.constant 0 : index
    %17 = vector.load %arg4[%c0_16, %c0_17] : memref<256x256xf32, #tpu.memory_space<vmem>>, vector<256x256xf32>
    %18 = arith.mulf %17, %15 : vector<256x256xf32>
    %cst_18 = arith.constant dense<0.000000e+00> : vector<256x128xf32>
    %19 = tpu.matmul %18, %13, %cst_18 {dimension_numbers = #tpu.dot_dimension_numbers<[1], [0], [0], [1], [0, 0, 1, 1], [], []>} : vector<256x256xf32>, vector<256x128xf32>, vector<256x128xf32> -> vector<256x128xf32>
    %20 = arith.addf %16, %19 : vector<256x128xf32>
    %c0_19 = arith.constant 0 : index
    %c0_20 = arith.constant 0 : index
    %21 = vector.load %arg15[%c0_19, %c0_20] : memref<256x128xf32, #tpu.memory_space<vmem>>, vector<256x128xf32>
    tpu.vector_store %arg15[%c0_19, %c0_20], %20 {strides = array<i32>} : memref<256x128xf32, #tpu.memory_space<vmem>>, vector<256x128xf32>,
    %c0_i32_21 = arith.constant 0 : i32
    %22 = arith.cmpi eq, %arg1, %c0_i32_21 : i32
    %23 = arith.extui %22 : i1 to i32
    %c0_i32_22 = arith.constant 0 : i32
    %24 = arith.cmpi ne, %23, %c0_i32_22 : i32
    scf.if %24 {
      %c0_23 = arith.constant 0 : index
      %c0_24 = arith.constant 0 : index
      %25 = vector.load %arg15[%c0_23, %c0_24] : memref<256x128xf32, #tpu.memory_space<vmem>>, vector<256x128xf32>
      %c0_25 = arith.constant 0 : index
      %c0_26 = arith.constant 0 : index
      %26 = vector.load %arg11[%c0_25, %c0_26] : memref<128x128xf32, #tpu.memory_space<vmem>>, vector<128x128xf32>
      %cst_27 = arith.constant dense<0.000000e+00> : vector<256x128xf32>
      %27 = tpu.matmul %25, %26, %cst_27 {dimension_numbers = #tpu.dot_dimension_numbers<[1], [0], [0], [1], [0, 0, 1, 1], [], []>} : vector<256x128xf32>, vector<128x128xf32>, vector<256x128xf32> -> vector<256x128xf32>
      %c0_28 = arith.constant 0 : index
      %c0_29 = arith.constant 0 : index
      %28 = vector.load %arg12[%c0_28, %c0_29] : memref<1x128xf32, #tpu.memory_space<vmem>>, vector<1x128xf32>
      %29 = vector.broadcast %28 : vector<1x128xf32> to vector<256x128xf32>
      %30 = arith.addf %27, %29 : vector<256x128xf32>
      %cst_30 = arith.constant 0.000000e+00 : f32
      %31 = vector.broadcast %cst_30 : f32 to vector<256x128xf32>
      %32 = arith.cmpf oge, %30, %31 : vector<256x128xf32>
      %cst_31 = arith.constant 0.00999999977 : f32
      %33 = vector.broadcast %cst_31 : f32 to vector<256x128xf32>
      %34 = arith.mulf %33, %30 : vector<256x128xf32>
      %35 = arith.select %32, %30, %34 : vector<256x128xi1>, vector<256x128xf32>
      %c0_32 = arith.constant 0 : index
      %c0_33 = arith.constant 0 : index
      %36 = vector.load %arg13[%c0_32, %c0_33] : memref<256x128xf32, #tpu.memory_space<vmem>>, vector<256x128xf32>
      tpu.vector_store %arg13[%c0_32, %c0_33], %35 {strides = array<i32>} : memref<256x128xf32, #tpu.memory_space<vmem>>, vector<256x128xf32>,
    } else {
    }
    return
  }
  func.func @transform_0(%arg0: i32, %arg1: i32) -> (i32, i32) {
    %c0_i32 = arith.constant 0 : i32
    %c0_i32_0 = arith.constant 0 : i32
    return %arg0, %c0_i32 : i32, i32
  }
  func.func @transform_1(%arg0: i32, %arg1: i32) -> (i32, i32) {
    %c0_i32 = arith.constant 0 : i32
    %c0_i32_0 = arith.constant 0 : i32
    return %arg1, %c0_i32 : i32, i32
  }
  func.func @transform_2(%arg0: i32, %arg1: i32) -> (i32, i32) {
    %c0_i32 = arith.constant 0 : i32
    return %arg0, %arg1 : i32, i32
  }
  func.func @transform_3(%arg0: i32, %arg1: i32) -> (i32, i32) {
    %c0_i32 = arith.constant 0 : i32
    %c0_i32_0 = arith.constant 0 : i32
    %c0_i32_1 = arith.constant 0 : i32
    return %c0_i32, %c0_i32_0 : i32, i32
  }
  func.func @transform_4(%arg0: i32, %arg1: i32) -> (i32, i32) {
    %c0_i32 = arith.constant 0 : i32
    %c0_i32_0 = arith.constant 0 : i32
    %c0_i32_1 = arith.constant 0 : i32
    return %c0_i32, %c0_i32_0 : i32, i32
  }
  func.func @transform_5(%arg0: i32, %arg1: i32) -> (i32, i32) {
    %c0_i32 = arith.constant 0 : i32
    %c0_i32_0 = arith.constant 0 : i32
    %c0_i32_1 = arith.constant 0 : i32
    return %c0_i32, %c0_i32_0 : i32, i32
  }
  func.func @transform_6(%arg0: i32, %arg1: i32) -> (i32, i32) {
    %c0_i32 = arith.constant 0 : i32
    %c0_i32_0 = arith.constant 0 : i32
    %c0_i32_1 = arith.constant 0 : i32
    return %c0_i32, %c0_i32_0 : i32, i32
  }
  func.func @transform_7(%arg0: i32, %arg1: i32) -> (i32, i32) {
    %c0_i32 = arith.constant 0 : i32
    %c0_i32_0 = arith.constant 0 : i32
    %c0_i32_1 = arith.constant 0 : i32
    return %c0_i32, %c0_i32_0 : i32, i32
  }
  func.func @transform_8(%arg0: i32, %arg1: i32) -> (i32, i32) {
    %c0_i32 = arith.constant 0 : i32
    %c0_i32_0 = arith.constant 0 : i32
    %c0_i32_1 = arith.constant 0 : i32
    return %c0_i32, %c0_i32_0 : i32, i32
  }
  func.func @transform_9(%arg0: i32, %arg1: i32) -> (i32, i32) {
    %c0_i32 = arith.constant 0 : i32
    %c0_i32_0 = arith.constant 0 : i32
    %c0_i32_1 = arith.constant 0 : i32
    return %c0_i32, %c0_i32_0 : i32, i32
  }
  func.func @transform_10(%arg0: i32, %arg1: i32) -> (i32, i32) {
    %c0_i32 = arith.constant 0 : i32
    %c0_i32_0 = arith.constant 0 : i32
    %c0_i32_1 = arith.constant 0 : i32
    return %c0_i32, %c0_i32_0 : i32, i32
  }
  func.func @transform_11(%arg0: i32, %arg1: i32) -> (i32, i32) {
    %c0_i32 = arith.constant 0 : i32
    %c0_i32_0 = arith.constant 0 : i32
    return %arg0, %c0_i32 : i32, i32
  }
}

</mosaic_0001>

<bundles_post_ra>
// kernel: parallel_retention_kernel.1
= control target key start
LH: loop header
LB: loop body
LE: loop exit
PB: predicated region body
PF: predicated region fallthrough
CT: control target
= control target key end

     0   :  { %16 = vsyncpa [#allocation5], 0  ;;  %s2825_s0 = inlined_call_operand.vmem [shape: f32[256,32], index: 0, kind: input, shape index: {}, may-alias: {0,1}]   ;;  %s2826_s1 = inlined_call_operand.vmem [shape: f32[256,32], index: 1, kind: input, shape index: {}, may-alias: {0,1}]   ;;  %s2827_s2 = inlined_call_operand.hbm [shape: f32[256,256], index: 2, kind: input, shape index: {}]   ;;  %s2828_s3 = inlined_call_operand.vmem [shape: f32[32,128], index: 3, kind: input, shape index: {}]   ;;  %s2829_s4 = inlined_call_operand.vmem [shape: f32[1,128], index: 4, kind: input, shape index: {}]   ;;  %s2830_s5 = inlined_call_operand.vmem [shape: f32[32,128], index: 5, kind: input, shape index: {}]   ;;  %s2831_s6 = inlined_call_operand.vmem [shape: f32[1,128], index: 6, kind: input, shape index: {}]   ;;  %s2832_s7 = inlined_call_operand.vmem [shape: f32[32,128], index: 7, kind: input, shape index: {}]   ;;  %s2833_s8 = inlined_call_operand.vmem [shape: f32[1,128], index: 8, kind: input, shape index: {}]   ;;  %s2834_s9 = inlined_call_operand.vmem [shape: f32[128,128], index: 9, kind: input, shape index: {}]   ;;  %s2835_s10 = inlined_call_operand.vmem [shape: f32[1,128], index: 10, kind: input, shape index: {}]   ;;  %s2836_s11 = inlined_call_operand.hbm [shape: f32[256,128], index: 11, kind: output, shape index: {}]  }
   0x1   :  { %17 = vsyncpa [#allocation6], 0  ;;  %s26_s19 = sshll.u32 %s2827_s2, 4  ;;  %s1949_s20 = smov [#allocation4]   ;;  %s27_s19 = int_to_ptr.hbm [resolvable:$true] %s26_s19 }
   0x2   :  { %s28_s21 = sshll.u32 %s1949_s20, 4  ;;  %s1950_s22 = smov 256   ;;  %s29_s21 = int_to_ptr.vmem [resolvable:$true] %s28_s21 }
   0x3   :  { %s1951_s23 = smov 16  }
   0x4   :  { %34 = dma.hbm_to_vmem [thread:$0]  %s27_s19, 8192, %s29_s21, [#allocation5], %s1950_s22, %s1950_s22, %s1951_s23  }
   0x5   :  { %1945 = dma.done.wait [#allocation5], 8192  }
   0x6   :  { %1946 = vsyncadd [#allocation5], 4294959104  ;;  %v94_v0 = vld [vmem:[%s2828_s3 + $0x18] sm:$0xff]  ;;  %v93_v1 = vld [vmem:[%s2828_s3 + $0x10] sm:$0xff]  ;;  %vm99_vm0 = vcmask 261120   ;;  %s1754_s23 = sshll.u32 %s2836_s11, 4  ;;  %s1755_s23 = int_to_ptr.hbm [resolvable:$true] %s1754_s23 }
   0x7   :  { %1863 = vmatpush.msra.mxu1 %v94_v0  ;;  %1864 = vmatpush.msra.mxu2 %v94_v0  ;;  %v92_v2 = vld [vmem:[%s2828_s3 + $0x8] sm:$0xff]  ;;  %v91_v3 = vld [vmem:[%s2828_s3] sm:$0xff]  ;;  %v89_v5 = vld [vmem:[%s2825_s0 + $0xf0] sm:$0xff]  ;;  %s1953_s24 = smov 128   ;;  %s1954_s25 = smov 8  }
   0x8   :  { %208 = vmatpush.msra.mxu0 %v94_v0  ;;  %v88_v4 = vld [vmem:[%s2825_s0 + $0xe8] sm:$0xff]  ;;  %v408_v6 = vld [vmem:[%s2830_s5 + $0x18] sm:$0xff]  ;;  %v407_v8 = vld [vmem:[%s2830_s5 + $0x10] sm:$0xff] }
   0x9   :  { %1865 = vmatpush.msra.mxu1 %v93_v1  ;;  %1866 = vmatpush.msra.mxu2 %v93_v1  ;;  %v626_v7 = vld [vmem:[%s2832_s7 + $0x18] sm:$0xff]  ;;  %v625_v9 = vld [vmem:[%s2832_s7 + $0x10] sm:$0xff]  ;;  %v406_v10 = vld [vmem:[%s2830_s5 + $0x8] sm:$0xff] }
   0xa   :  { %209 = vmatpush.msra.mxu0 %v93_v1  ;;  %v624_v11 = vld [vmem:[%s2832_s7 + $0x8] sm:$0xff]  ;;  %v405_v12 = vld [vmem:[%s2830_s5] sm:$0xff]  ;;  %v90_v14 = vld [vmem:[%s2825_s0 + $0xf8] sm:$0xff] }
   0xb   :  { %1867 = vmatpush.msra.mxu1 %v92_v2  ;;  %1868 = vmatpush.msra.mxu2 %v92_v2  ;;  %v623_v13 = vld [vmem:[%s2832_s7] sm:$0xff]  ;;  %v374_v16 = vld [vmem:[%s2826_s1 + $0x8] sm:$0xff]  ;;  %v375_v17 = vld [vmem:[%s2826_s1 + $0x10] sm:$0xff] }
   0xc   :  { %210 = vmatpush.msra.mxu0 %v92_v2  ;;  %v373_v15 = vld [vmem:[%s2826_s1] sm:$0xff]  ;;  %v376_v18 = vld [vmem:[%s2826_s1 + $0x18] sm:$0xff]  ;;  %v378_v20 = vld [vmem:[%s2826_s1 + $0x28] sm:$0xff] }
   0xd   :  { %1869 = vmatpush.msra.mxu1 %v91_v3  ;;  %1870 = vmatpush.msra.mxu2 %v91_v3  ;;  %v377_v19 = vld [vmem:[%s2826_s1 + $0x20] sm:$0xff]  ;;  %v379_v21 = vld [vmem:[%s2826_s1 + $0x30] sm:$0xff]  ;;  %v380_v22 = vld [vmem:[%s2826_s1 + $0x38] sm:$0xff] }
   0xe   :  { %1796 = vmatmul.msk.f32.vlgmr.msra.gmra.mxu1 %vm99_vm0, %v88_v4  ;;  %1797 = vmatmul.msk.f32.vlgmr.msra.gmra.mxu2 %vm99_vm0, %v89_v5  ;;  %v381_v23 = vld [vmem:[%s2826_s1 + $0x40] sm:$0xff]  ;;  %v382_v24 = vld [vmem:[%s2826_s1 + $0x48] sm:$0xff]  ;;  %v383_v25 = vld [vmem:[%s2826_s1 + $0x50] sm:$0xff] }
   0xf   :  { %522 = vmatpush.msrb.mxu1 %v408_v6  ;;  %643 = vmatpush.msrb.mxu2 %v626_v7  ;;  %v384_v26 = vld [vmem:[%s2826_s1 + $0x58] sm:$0xff]  ;;  %v385_v27 = vld [vmem:[%s2826_s1 + $0x60] sm:$0xff]  ;;  %v386_v28 = vld [vmem:[%s2826_s1 + $0x68] sm:$0xff] }
  0x10   :  { %211 = vmatpush.msra.mxu0 %v91_v3  ;;  %v387_v29 = vld [vmem:[%s2826_s1 + $0x70] sm:$0xff]  ;;  %v388_v31 = vld [vmem:[%s2826_s1 + $0x78] sm:$0xff]  ;;  %v389_v34 = vld [vmem:[%s2826_s1 + $0x80] sm:$0xff] }
  0x11   :  { %523 = vmatpush.msrb.mxu1 %v407_v8  ;;  %644 = vmatpush.msrb.mxu2 %v625_v9  ;;  %v390_v37 = vld [vmem:[%s2826_s1 + $0x88] sm:$0xff]  ;;  %v391_v40 = vld [vmem:[%s2826_s1 + $0x90] sm:$0xff]  ;;  %v392_v43 = vld [vmem:[%s2826_s1 + $0x98] sm:$0xff] }
  0x12   :  { %v59_v44 = vld [vmem:[%s2825_s0] sm:$0xff]  ;;  %v60_v48 = vld [vmem:[%s2825_s0 + $0x8] sm:$0xff]  ;;  %v61_v52 = vld [vmem:[%s2825_s0 + $0x10] sm:$0xff] }
  0x13   :  { %524 = vmatpush.msrb.mxu1 %v406_v10  ;;  %645 = vmatpush.msrb.mxu2 %v624_v11  ;;  %v393_v47 = vld [vmem:[%s2826_s1 + $0xa0] sm:$0xff]  ;;  %v394_v51 = vld [vmem:[%s2826_s1 + $0xa8] sm:$0xff]  ;;  %v395_v55 = vld [vmem:[%s2826_s1 + $0xb0] sm:$0xff] }
  0x14   :  { %1767 = vmatmul.msk.f32.vlgmr.msra.gmra.mxu0 %vm99_vm0, %v59_v44  ;;  %v62_v56 = vld [vmem:[%s2825_s0 + $0x18] sm:$0xff]  ;;  %v63_v60 = vld [vmem:[%s2825_s0 + $0x20] sm:$0xff]  ;;  %v64_v0 = vld [vmem:[%s2825_s0 + $0x28] sm:$0xff] }
  0x15   :  { %525 = vmatpush.msrb.mxu1 %v405_v12  ;;  %646 = vmatpush.msrb.mxu2 %v623_v13  ;;  %v396_v59 = vld [vmem:[%s2826_s1 + $0xb8] sm:$0xff]  ;;  %v397_v63 = vld [vmem:[%s2826_s1 + $0xc0] sm:$0xff]  ;;  %v398_v3 = vld [vmem:[%s2826_s1 + $0xc8] sm:$0xff] }
  0x16   :  { %1798 = vmatmul.msk.f32.gmra.mxu2 %vm99_vm0, %v90_v14  ;;  %1799 = vmatmul.msk.f32.vlgmr.msrb.gmra.mxu1 %vm99_vm0, %v373_v15  ;;  %v65_v4 = vld [vmem:[%s2825_s0 + $0x30] sm:$0xff]  ;;  %v66_v8 = vld [vmem:[%s2825_s0 + $0x38] sm:$0xff]  ;;  %v67_v12 = vld [vmem:[%s2825_s0 + $0x40] sm:$0xff] }
  0x17   :  { %v399_v7 = vld [vmem:[%s2826_s1 + $0xd0] sm:$0xff]  ;;  %v400_v11 = vld [vmem:[%s2826_s1 + $0xd8] sm:$0xff] }
  0x1c   :  { %1768 = vmatmul.msk.f32.gmra.mxu0 %vm99_vm0, %v60_v48 }
  0x1e   :  { %1800 = vmatmul.msk.f32.gmra.mxu1 %vm99_vm0, %v374_v16  ;;  %1831 = vmatmul.msk.f32.vlgmr.msrb.gmra.mxu2 %vm99_vm0, %v373_v15  ;;  %v401_v15 = vld [vmem:[%s2826_s1 + $0xe0] sm:$0xff] }
  0x24   :  { %1769 = vmatmul.msk.f32.gmra.mxu0 %vm99_vm0, %v61_v52 }
  0x26   :  { %1801 = vmatmul.msk.f32.gmra.mxu1 %vm99_vm0, %v375_v17  ;;  %1832 = vmatmul.msk.f32.gmra.mxu2 %vm99_vm0, %v374_v16  ;;  %v68_v16 = vld [vmem:[%s2825_s0 + $0x48] sm:$0xff] }
  0x2c   :  { %1770 = vmatmul.msk.f32.gmra.mxu0 %vm99_vm0, %v62_v56 }
  0x2e   :  { %1802 = vmatmul.msk.f32.gmra.mxu1 %vm99_vm0, %v376_v18  ;;  %1833 = vmatmul.msk.f32.gmra.mxu2 %vm99_vm0, %v375_v17 }
  0x34   :  { %1771 = vmatmul.msk.f32.gmra.mxu0 %vm99_vm0, %v63_v60 }
  0x36   :  { %1803 = vmatmul.msk.f32.gmra.mxu1 %vm99_vm0, %v377_v19  ;;  %1834 = vmatmul.msk.f32.gmra.mxu2 %vm99_vm0, %v376_v18 }
  0x3c   :  { %1772 = vmatmul.msk.f32.gmra.mxu0 %vm99_vm0, %v64_v0 }
  0x3e   :  { %1804 = vmatmul.msk.f32.gmra.mxu1 %vm99_vm0, %v378_v20  ;;  %1835 = vmatmul.msk.f32.gmra.mxu2 %vm99_vm0, %v377_v19  ;;  %v402_v19 = vld [vmem:[%s2826_s1 + $0xe8] sm:$0xff] }
  0x44   :  { %1773 = vmatmul.msk.f32.gmra.mxu0 %vm99_vm0, %v65_v4 }
  0x46   :  { %1805 = vmatmul.msk.f32.gmra.mxu1 %vm99_vm0, %v379_v21  ;;  %1836 = vmatmul.msk.f32.gmra.mxu2 %vm99_vm0, %v378_v20  ;;  %v69_v20 = vld [vmem:[%s2825_s0 + $0x50] sm:$0xff] }
  0x4c   :  { %1774 = vmatmul.msk.f32.gmra.mxu0 %vm99_vm0, %v66_v8 }
  0x4e   :  { %1806 = vmatmul.msk.f32.gmra.mxu1 %vm99_vm0, %v380_v22  ;;  %1837 = vmatmul.msk.f32.gmra.mxu2 %vm99_vm0, %v379_v21 }
  0x54   :  { %1775 = vmatmul.msk.f32.gmra.mxu0 %vm99_vm0, %v67_v12 }
  0x56   :  { %1807 = vmatmul.msk.f32.gmra.mxu1 %vm99_vm0, %v381_v23  ;;  %1838 = vmatmul.msk.f32.gmra.mxu2 %vm99_vm0, %v380_v22 }
  0x5c   :  { %1776 = vmatmul.msk.f32.gmra.mxu0 %vm99_vm0, %v68_v16 }
  0x5e   :  { %1808 = vmatmul.msk.f32.gmra.mxu1 %vm99_vm0, %v382_v24  ;;  %1839 = vmatmul.msk.f32.gmra.mxu2 %vm99_vm0, %v381_v23  ;;  %v403_v23 = vld [vmem:[%s2826_s1 + $0xf0] sm:$0xff] }
  0x64   :  { %1777 = vmatmul.msk.f32.gmra.mxu0 %vm99_vm0, %v69_v20 }
  0x66   :  { %1809 = vmatmul.msk.f32.gmra.mxu1 %vm99_vm0, %v383_v25  ;;  %1840 = vmatmul.msk.f32.gmra.mxu2 %vm99_vm0, %v382_v24  ;;  %v70_v24 = vld [vmem:[%s2825_s0 + $0x58] sm:$0xff] }
  0x6c   :  { %1778 = vmatmul.msk.f32.gmra.mxu0 %vm99_vm0, %v70_v24 }
  0x6e   :  { %1810 = vmatmul.msk.f32.gmra.mxu1 %vm99_vm0, %v384_v26  ;;  %1841 = vmatmul.msk.f32.gmra.mxu2 %vm99_vm0, %v383_v25 }
  0x76   :  { %1811 = vmatmul.msk.f32.gmra.mxu1 %vm99_vm0, %v385_v27  ;;  %1842 = vmatmul.msk.f32.gmra.mxu2 %vm99_vm0, %v384_v26  ;;  %v2319_v26 = vld [vmem:[%s2831_s6] ss:$0 sm:$0xff] }
  0x7e   :  { %1812 = vmatmul.msk.f32.gmra.mxu1 %vm99_vm0, %v386_v28  ;;  %1843 = vmatmul.msk.f32.gmra.mxu2 %vm99_vm0, %v385_v27 }
  0x86   :  { %1813 = vmatmul.msk.f32.gmra.mxu1 %vm99_vm0, %v387_v29  ;;  %1844 = vmatmul.msk.f32.gmra.mxu2 %vm99_vm0, %v386_v28  ;;  %v404_v28 = vld [vmem:[%s2826_s1 + $0xf8] sm:$0xff] }
  0x8b   :  { %v2140_v30 = vpop.f32.mrf.mxu1 }
  0x8e   :  { %1814 = vmatmul.msk.f32.gmra.mxu1 %vm99_vm0, %v388_v31  ;;  %1845 = vmatmul.msk.f32.gmra.mxu2 %vm99_vm0, %v387_v29 }
  0x91   :  { %v2147_v32 = vpop.f32.mrf.mxu2 }
  0x93   :  { %v2149_v33 = vpop.f32.mrf.mxu1 }
  0x96   :  { %1815 = vmatmul.msk.f32.gmra.mxu1 %vm99_vm0, %v389_v34  ;;  %1846 = vmatmul.msk.f32.gmra.mxu2 %vm99_vm0, %v388_v31  ;;  %v71_v31 = vld [vmem:[%s2825_s0 + $0x60] sm:$0xff] }
  0x97   :  { %1779 = vmatmul.msk.f32.gmra.mxu0 %vm99_vm0, %v71_v31 }
  0x99   :  { %v2156_v35 = vpop.f32.mrf.mxu2 }
  0x9b   :  { %v2158_v36 = vpop.f32.mrf.mxu1 }
  0x9c   :  { %v531_v31 = vadd.f32 %v2319_v26, %v2158_v36  ;;  %v79_v36 = vld [vmem:[%s2825_s0 + $0xa0] sm:$0xff] }
  0x9e   :  { %1816 = vmatmul.msk.f32.gmra.mxu1 %vm99_vm0, %v390_v37  ;;  %1847 = vmatmul.msk.f32.gmra.mxu2 %vm99_vm0, %v389_v34 }
  0xa1   :  { %v2165_v38 = vpop.f32.mrf.mxu2 }
  0xa3   :  { %v2167_v39 = vpop.f32.mrf.mxu1 }
  0xa6   :  { %1817 = vmatmul.msk.f32.gmra.mxu1 %vm99_vm0, %v391_v40  ;;  %1848 = vmatmul.msk.f32.gmra.mxu2 %vm99_vm0, %v390_v37 }
  0xa9   :  { %v2174_v41 = vpop.f32.mrf.mxu2 }
  0xab   :  { %v2176_v42 = vpop.f32.mrf.mxu1 }
  0xae   :  { %1818 = vmatmul.msk.f32.gmra.mxu1 %vm99_vm0, %v392_v43  ;;  %1849 = vmatmul.msk.f32.gmra.mxu2 %vm99_vm0, %v391_v40 }
  0xb1   :  { %v2187_v45 = vpop.f32.mrf.mxu2 }
  0xb3   :  { %v2189_v46 = vpop.f32.mrf.mxu1 }
  0xb6   :  { %1819 = vmatmul.msk.f32.gmra.mxu1 %vm99_vm0, %v393_v47  ;;  %1850 = vmatmul.msk.f32.gmra.mxu2 %vm99_vm0, %v392_v43  ;;  %v72_v43 = vld [vmem:[%s2825_s0 + $0x68] sm:$0xff] }
  0xb7   :  { %1780 = vmatmul.msk.f32.gmra.mxu0 %vm99_vm0, %v72_v43 }
  0xb9   :  { %v2200_v49 = vpop.f32.mrf.mxu2 }
  0xbb   :  { %v2202_v50 = vpop.f32.mrf.mxu1 }
  0xbe   :  { %1820 = vmatmul.msk.f32.gmra.mxu1 %vm99_vm0, %v394_v51  ;;  %1851 = vmatmul.msk.f32.gmra.mxu2 %vm99_vm0, %v393_v47  ;;  %v2342_v47 = vld [vmem:[%s2833_s8] ss:$0 sm:$0xff] }
  0xbf   :  { %v655_v20 = vadd.f32 %v2342_v47, %v2187_v45  ;;  %v649_v45 = vadd.f32 %v2342_v47, %v2165_v38 }
  0xc1   :  { %v2213_v53 = vpop.f32.mrf.mxu2 }
  0xc3   :  { %v2215_v54 = vpop.f32.mrf.mxu1 }
  0xc6   :  { %1821 = vmatmul.msk.f32.gmra.mxu1 %vm99_vm0, %v395_v55  ;;  %1852 = vmatmul.msk.f32.gmra.mxu2 %vm99_vm0, %v394_v51 }
  0xc9   :  { %v2226_v57 = vpop.f32.mrf.mxu2 }
  0xcb   :  { %v2228_v58 = vpop.f32.mrf.mxu1 }
  0xce   :  { %1822 = vmatmul.msk.f32.gmra.mxu1 %vm99_vm0, %v396_v59  ;;  %1853 = vmatmul.msk.f32.gmra.mxu2 %vm99_vm0, %v395_v55 }
  0xd1   :  { %v2239_v61 = vpop.f32.mrf.mxu2 }
  0xd2   :  { %v667_v16 = vadd.f32 %v2342_v47, %v2239_v61  ;;  %v661_v61 = vadd.f32 %v2342_v47, %v2213_v53  ;;  %v76_v53 = vld [vmem:[%s2825_s0 + $0x88] sm:$0xff] }
  0xd3   :  { %v2241_v62 = vpop.f32.mrf.mxu1 }
  0xd6   :  { %1823 = vmatmul.msk.f32.gmra.mxu1 %vm99_vm0, %v397_v63  ;;  %1854 = vmatmul.msk.f32.gmra.mxu2 %vm99_vm0, %v396_v59  ;;  %v73_v59 = vld [vmem:[%s2825_s0 + $0x70] sm:$0xff] }
  0xd7   :  { %1781 = vmatmul.msk.f32.gmra.mxu0 %vm99_vm0, %v73_v59 }
  0xd9   :  { %v2252_v1 = vpop.f32.mrf.mxu2 }
  0xdb   :  { %v2254_v2 = vpop.f32.mrf.mxu1 }
  0xde   :  { %1824 = vmatmul.msk.f32.gmra.mxu1 %vm99_vm0, %v398_v3  ;;  %1855 = vmatmul.msk.f32.gmra.mxu2 %vm99_vm0, %v397_v63 }
  0xe1   :  { %v2265_v5 = vpop.f32.mrf.mxu2 }
  0xe3   :  { %v2267_v6 = vpop.f32.mrf.mxu1 }
  0xe6   :  { %1825 = vmatmul.msk.f32.gmra.mxu1 %vm99_vm0, %v399_v7  ;;  %1856 = vmatmul.msk.f32.gmra.mxu2 %vm99_vm0, %v398_v3 }
  0xe9   :  { %v2278_v9 = vpop.f32.mrf.mxu2 }
  0xea   :  { %v676_v12 = vadd.f32 %v2342_v47, %v2278_v9  ;;  %v552_v9 = vadd.f32 %v2319_v26, %v2241_v62  ;;  %v658_v62 = vadd.f32 %v2342_v47, %v2200_v49  ;;  %v652_v49 = vadd.f32 %v2342_v47, %v2174_v41 }
  0xeb   :  { %v560_v10 = vpop.f32.mrf.mxu1 }
  0xec   :  { %v561_v63 = vadd.f32 %v2319_v26, %v560_v10  ;;  %v74_v10 = vld [vmem:[%s2825_s0 + $0x78] sm:$0xff] }
  0xed   :  { %1782 = vmatmul.msk.f32.gmra.mxu0 %vm99_vm0, %v74_v10 }
  0xee   :  { %1826 = vmatmul.msk.f32.gmra.mxu1 %vm99_vm0, %v400_v11  ;;  %1857 = vmatmul.msk.f32.gmra.mxu2 %vm99_vm0, %v399_v7  ;;  %v558_v7 = vadd.f32 %v2319_v26, %v2267_v6  ;;  %v673_v6 = vadd.f32 %v2342_v47, %v2265_v5  ;;  %v75_v5 = vld [vmem:[%s2825_s0 + $0x80] sm:$0xff] }
  0xf1   :  { %v678_v13 = vpop.f32.mrf.mxu2 }
  0xf2   :  { %v679_v8 = vadd.f32 %v2342_v47, %v678_v13  ;;  %v670_v13 = vadd.f32 %v2342_v47, %v2252_v1  ;;  %v664_v1 = vadd.f32 %v2342_v47, %v2226_v57  ;;  %v546_v57 = vadd.f32 %v2319_v26, %v2215_v54 }
  0xf3   :  { %v563_v14 = vpop.f32.mrf.mxu1 }
  0xf4   :  { %v564_v51 = vadd.f32 %v2319_v26, %v563_v14  ;;  %v555_v14 = vadd.f32 %v2319_v26, %v2254_v2  ;;  %v213_v2 = vpop.f32.mrf.mxu0 }
  0xf5   :  { %1783 = vmatmul.msk.f32.gmra.mxu0 %vm99_vm0, %v75_v5 }
  0xf6   :  { %1827 = vmatmul.msk.f32.gmra.mxu1 %vm99_vm0, %v401_v15  ;;  %1858 = vmatmul.msk.f32.gmra.mxu2 %vm99_vm0, %v400_v11 }
  0xf9   :  { %v681_v17 = vpop.f32.mrf.mxu2 }
  0xfa   :  { %v682_v3 = vadd.f32 %v2342_v47, %v681_v17 }
  0xfb   :  { %v566_v18 = vpop.f32.mrf.mxu1 }
  0xfc   :  { %v567_v44 = vadd.f32 %v2319_v26, %v566_v18  ;;  %v549_v18 = vadd.f32 %v2319_v26, %v2228_v58  ;;  %v216_v58 = vpop.f32.mrf.mxu0 }
  0xfd   :  { %1784 = vmatmul.msk.f32.gmra.mxu0 %vm99_vm0, %v76_v53 }
  0xfe   :  { %1828 = vmatmul.msk.f32.gmra.mxu1 %vm99_vm0, %v402_v19  ;;  %1859 = vmatmul.msk.f32.gmra.mxu2 %vm99_vm0, %v401_v15 }
 0x101   :  { %v684_v21 = vpop.f32.mrf.mxu2 }
 0x102   :  { %v685_v0 = vadd.f32 %v2342_v47, %v684_v21 }
 0x103   :  { %v569_v22 = vpop.f32.mrf.mxu1 }
 0x104   :  { %v570_v37 = vadd.f32 %v2319_v26, %v569_v22  ;;  %v543_v22 = vadd.f32 %v2319_v26, %v2202_v50  ;;  %v219_v24 = vpop.f32.mrf.mxu0  ;;  %v77_v50 = vld [vmem:[%s2825_s0 + $0x90] sm:$0xff] }
 0x105   :  { %1785 = vmatmul.msk.f32.gmra.mxu0 %vm99_vm0, %v77_v50  ;;  %v86_v50 = vld [vmem:[%s2825_s0 + $0xd8] sm:$0xff] }
 0x106   :  { %1829 = vmatmul.msk.f32.gmra.mxu1 %vm99_vm0, %v403_v23  ;;  %1860 = vmatmul.msk.f32.gmra.mxu2 %vm99_vm0, %v402_v19 }
 0x109   :  { %v687_v25 = vpop.f32.mrf.mxu2 }
 0x10a   :  { %v688_v60 = vadd.f32 %v2342_v47, %v687_v25  ;;  %v537_v25 = vadd.f32 %v2319_v26, %v2176_v42  ;;  %v2442_v42 = vld [vmem:[%s2829_s4] ss:$0 sm:$0xff] }
 0x10b   :  { %v572_v27 = vpop.f32.mrf.mxu1 }
 0x10c   :  { %v573_v29 = vadd.f32 %v2319_v26, %v572_v27  ;;  %v222_v27 = vpop.f32.mrf.mxu0 }
 0x10e   :  { %1830 = vmatmul.msk.f32.gmra.mxu1 %vm99_vm0, %v404_v28  ;;  %1861 = vmatmul.msk.f32.gmra.mxu2 %vm99_vm0, %v403_v23  ;;  %v540_v23 = vadd.f32 %v2319_v26, %v2189_v46  ;;  %v534_v46 = vadd.f32 %v2319_v26, %v2167_v39 }
 0x10f   :  { %776 = vmatpush.xpose.msra.mxu3 %v573_v29  ;;  %v78_v29 = vld [vmem:[%s2825_s0 + $0x98] sm:$0xff] }
 0x110   :  { %1786 = vmatmul.msk.f32.gmra.mxu0 %vm99_vm0, %v78_v29 }
 0x111   :  { %v690_v34 = vpop.f32.mrf.mxu2 }
 0x112   :  { %v691_v52 = vadd.f32 %v2342_v47, %v690_v34  ;;  %v528_v34 = vadd.f32 %v2319_v26, %v2149_v33 }
 0x113   :  { %777 = vmatpush.xpose.msra.mxu3 %v570_v37  ;;  %v2332_v40 = vpop.f32.mrf.mxu1  ;;  %v2449_v37 = vadd.f32 %v2442_v42, %v213_v2  ;;  %v83_v2 = vld [vmem:[%s2825_s0 + $0xc0] sm:$0xff] }
 0x114   :  { %v225_v43 = vpop.f32.mrf.mxu0 }
 0x116   :  { %1862 = vmatmul.msk.f32.gmra.mxu2 %vm99_vm0, %v404_v28 }
 0x117   :  { %778 = vmatpush.xpose.msra.mxu3 %v567_v44 }
 0x118   :  { %1787 = vmatmul.msk.f32.gmra.mxu0 %vm99_vm0, %v79_v36 }
 0x119   :  { %v693_v48 = vpop.f32.mrf.mxu2 }
 0x11a   :  { %v694_v55 = vadd.f32 %v2342_v47, %v693_v48 }
 0x11b   :  { %779 = vmatpush.xpose.msra.mxu3 %v564_v51  ;;  %v2348_v56 = vpop.f32.mrf.mxu1  ;;  %v2461_v51 = vadd.f32 %v2442_v42, %v216_v58 }
 0x11c   :  { %1162 = vmatpush.msra.mxu1 %v694_v55  ;;  %v228_v33 = vpop.f32.mrf.mxu0  ;;  %v80_v55 = vld [vmem:[%s2825_s0 + $0xa8] sm:$0xff] }
 0x11e   :  { %1163 = vmatpush.msra.mxu1 %v691_v52 }
 0x11f   :  { %780 = vmatpush.xpose.msra.mxu3 %v561_v63 }
 0x120   :  { %1164 = vmatpush.msra.mxu1 %v688_v60  ;;  %1788 = vmatmul.msk.f32.gmra.mxu0 %vm99_vm0, %v80_v55  ;;  %v2473_v60 = vadd.f32 %v2442_v42, %v219_v24 }
 0x121   :  { %v2358_v4 = vpop.f32.mrf.mxu2 }
 0x122   :  { %1165 = vmatpush.msra.mxu1 %v685_v0 }
 0x123   :  { %781 = vmatpush.xpose.msra.mxu3 %v558_v7  ;;  %v2363_v11 = vpop.f32.mrf.mxu1 }
 0x124   :  { %1166 = vmatpush.msra.mxu1 %v682_v3  ;;  %v231_v63 = vpop.f32.mrf.mxu0  ;;  %v81_v3 = vld [vmem:[%s2825_s0 + $0xb0] sm:$0xff] }
 0x126   :  { %1167 = vmatpush.msra.mxu1 %v679_v8  ;;  %v2485_v8 = vadd.f32 %v2442_v42, %v222_v27 }
 0x127   :  { %782 = vmatpush.xpose.msra.mxu3 %v555_v14  ;;  %v82_v14 = vld [vmem:[%s2825_s0 + $0xb8] sm:$0xff] }
 0x128   :  { %1168 = vmatpush.msra.mxu1 %v676_v12  ;;  %1789 = vmatmul.msk.f32.gmra.mxu0 %vm99_vm0, %v81_v3 }
 0x129   :  { %v2377_v15 = vpop.f32.mrf.mxu2 }
 0x12a   :  { %1169 = vmatpush.msra.mxu1 %v673_v6 }
 0x12b   :  { %783 = vmatpush.xpose.msra.mxu3 %v552_v9  ;;  %v2383_v17 = vpop.f32.mrf.mxu1 }
 0x12c   :  { %1170 = vmatpush.msra.mxu1 %v670_v13  ;;  %v234_v10 = vpop.f32.mrf.mxu0  ;;  %v2497_v13 = vadd.f32 %v2442_v42, %v225_v43 }
 0x12e   :  { %1171 = vmatpush.msra.mxu1 %v667_v16 }
 0x12f   :  { %784 = vmatpush.xpose.msra.mxu3 %v549_v18 }
 0x130   :  { %1172 = vmatpush.msra.mxu1 %v664_v1  ;;  %1790 = vmatmul.msk.f32.gmra.mxu0 %vm99_vm0, %v82_v14  ;;  %v2505_v1 = vadd.f32 %v2442_v42, %v228_v33 }
 0x131   :  { %v2397_v19 = vpop.f32.mrf.mxu2 }
 0x132   :  { %1173 = vmatpush.msra.mxu1 %v661_v61  ;;  %v84_v61 = vld [vmem:[%s2825_s0 + $0xc8] sm:$0xff] }
 0x133   :  { %785 = vmatpush.xpose.msra.mxu3 %v546_v57  ;;  %v2403_v21 = vpop.f32.mrf.mxu1 }
 0x134   :  { %1174 = vmatpush.msra.mxu1 %v658_v62  ;;  %v237_v9 = vpop.f32.mrf.mxu0 }
 0x136   :  { %1175 = vmatpush.msra.mxu1 %v655_v20  ;;  %v2513_v20 = vadd.f32 %v2442_v42, %v231_v63 }
 0x137   :  { %786 = vmatpush.xpose.msra.mxu3 %v543_v22 }
 0x138   :  { %1176 = vmatpush.msra.mxu1 %v652_v49  ;;  %1791 = vmatmul.msk.f32.gmra.mxu0 %vm99_vm0, %v83_v2  ;;  %v85_v49 = vld [vmem:[%s2825_s0 + $0xd0] sm:$0xff] }
 0x139   :  { %v2415_v54 = vpop.f32.mrf.mxu2 }
 0x13a   :  { %1177 = vmatpush.msra.mxu1 %v649_v45  ;;  %v2521_v45 = vadd.f32 %v2442_v42, %v234_v10 }
 0x13b   :  { %787 = vmatpush.xpose.msra.mxu3 %v540_v23  ;;  %v2419_v41 = vpop.f32.mrf.mxu1 }
 0x13c   :  { %v240_v18 = vpop.f32.mrf.mxu0 }
 0x13d   :  { %v2539_v33 = vadd.f32 %v2442_v42, %v240_v18 }
 0x13f   :  { %788 = vmatpush.xpose.msra.mxu3 %v537_v25 }
 0x140   :  { %1792 = vmatmul.msk.f32.gmra.mxu0 %vm99_vm0, %v84_v61 }
 0x141   :  { %v2427_v38 = vpop.f32.mrf.mxu2 }
 0x143   :  { %789 = vmatpush.xpose.msra.mxu3 %v534_v46  ;;  %v2431_v28 = vpop.f32.mrf.mxu1  ;;  %v2529_v46 = vadd.f32 %v2442_v42, %v237_v9 }
 0x144   :  { %v243_v58 = vpop.f32.mrf.mxu0 }
 0x145   :  { %v2546_v9 = vadd.f32 %v2442_v42, %v243_v58 }
 0x147   :  { %790 = vmatpush.xpose.msra.mxu3 %v531_v31 }
 0x148   :  { %1793 = vmatmul.msk.f32.gmra.mxu0 %vm99_vm0, %v85_v49 }
 0x149   :  { %v2444_v39 = vpop.f32.mrf.mxu2 }
 0x14b   :  { %791 = vmatpush.xpose.msra.mxu3 %v528_v34  ;;  %v2451_v44 = vpop.f32.mrf.mxu1  ;;  %v87_v34 = vld [vmem:[%s2825_s0 + $0xe0] sm:$0xff] }
 0x14c   :  { %v246_v23 = vpop.f32.mrf.mxu0 }
 0x14e   :  { %792 = vmatmul.f32.vlgmr.msra.gmra.mxu3 %v2449_v37 }
 0x150   :  { %1794 = vmatmul.msk.f32.gmra.mxu0 %vm99_vm0, %v86_v50 }
 0x151   :  { %v2458_v48 = vpop.f32.mrf.mxu2 }
 0x153   :  { %v2463_v52 = vpop.f32.mrf.mxu1 }
 0x154   :  { %v249_v27 = vpop.f32.mrf.mxu0 }
 0x156   :  { %795 = vmatmul.f32.gmra.mxu3 %v2461_v51 }
 0x158   :  { %1795 = vmatmul.msk.f32.gmra.mxu0 %vm99_vm0, %v87_v34 }
 0x159   :  { %v2470_v59 = vpop.f32.mrf.mxu2 }
 0x15b   :  { %v2475_v0 = vpop.f32.mrf.mxu1 }
 0x15c   :  { %v252_v55 = vpop.f32.mrf.mxu0  ;;  %v603_v50 = vadd.f32 %v2319_v26, %v2475_v0  ;;  %v2572_v0 = vadd.f32 %v2442_v42, %v249_v27  ;;  %v594_v27 = vadd.f32 %v2319_v26, %v2431_v28  ;;  %v697_v28 = vadd.f32 %v2342_v47, %v2358_v4 }
 0x15d   :  { %v579_v4 = vadd.f32 %v2319_v26, %v2348_v56 }
 0x15e   :  { %798 = vmatmul.f32.gmra.mxu3 %v2473_v60 }
 0x161   :  { %v2482_v7 = vpop.f32.mrf.mxu2 }
 0x163   :  { %v2487_v12 = vpop.f32.mrf.mxu1 }
 0x164   :  { %v255_v61 = vpop.f32.mrf.mxu0  ;;  %v606_v49 = vadd.f32 %v2319_v26, %v2487_v12  ;;  %v721_v12 = vadd.f32 %v2342_v47, %v2482_v7  ;;  %v712_v7 = vadd.f32 %v2342_v47, %v2444_v39  ;;  %v703_v39 = vadd.f32 %v2342_v47, %v2397_v19 }
 0x166   :  { %801 = vmatmul.f32.gmra.mxu3 %v2485_v8 }
 0x169   :  { %v2494_v6 = vpop.f32.mrf.mxu2 }
 0x16b   :  { %v608_v16 = vpop.f32.mrf.mxu1 }
 0x16c   :  { %v609_v18 = vadd.f32 %v2319_v26, %v608_v16 }
 0x16e   :  { %804 = vmatmul.f32.gmra.mxu3 %v2497_v13 }
 0x171   :  { %v726_v5 = vpop.f32.mrf.mxu2 }
 0x172   :  { %v727_v16 = vadd.f32 %v2342_v47, %v726_v5  ;;  %v718_v5 = vadd.f32 %v2342_v47, %v2470_v59 }
 0x173   :  { %v611_v62 = vpop.f32.mrf.mxu1 }
 0x174   :  { %v612_v3 = vadd.f32 %v2319_v26, %v611_v62 }
 0x176   :  { %807 = vmatmul.f32.gmra.mxu3 %v2505_v1 }
 0x179   :  { %v729_v57 = vpop.f32.mrf.mxu2 }
 0x17a   :  { %v730_v58 = vadd.f32 %v2342_v47, %v729_v57  ;;  %v600_v57 = vadd.f32 %v2319_v26, %v2463_v52  ;;  %v709_v52 = vadd.f32 %v2342_v47, %v2427_v38  ;;  %v591_v38 = vadd.f32 %v2319_v26, %v2419_v41 }
 0x17b   :  { %v614_v53 = vpop.f32.mrf.mxu1  ;;  %v582_v41 = vadd.f32 %v2319_v26, %v2363_v11 }
 0x17c   :  { %v615_v63 = vadd.f32 %v2319_v26, %v614_v53 }
 0x17e   :  { %810 = vmatmul.f32.gmra.mxu3 %v2513_v20 }
 0x181   :  { %v732_v22 = vpop.f32.mrf.mxu2 }
 0x182   :  { %v733_v62 = vadd.f32 %v2342_v47, %v732_v22  ;;  %v724_v22 = vadd.f32 %v2342_v47, %v2494_v6  ;;  %v715_v6 = vadd.f32 %v2342_v47, %v2458_v48  ;;  %v706_v48 = vadd.f32 %v2342_v47, %v2415_v54 }
 0x183   :  { %v617_v24 = vpop.f32.mrf.mxu1  ;;  %v588_v54 = vadd.f32 %v2319_v26, %v2403_v21 }
 0x184   :  { %v618_v43 = vadd.f32 %v2319_v26, %v617_v24  ;;  %v2557_v24 = vadd.f32 %v2442_v42, %v246_v23  ;;  %v597_v23 = vadd.f32 %v2319_v26, %v2451_v44  ;;  %v2588_v44 = vadd.f32 %v2442_v42, %v252_v55 }
 0x186   :  { %813 = vmatmul.f32.gmra.mxu3 %v2521_v45 }
 0x189   :  { %v735_v25 = vpop.f32.mrf.mxu2 }
 0x18a   :  { %v736_v53 = vadd.f32 %v2342_v47, %v735_v25  ;;  %v258_v25 = vpop.f32.mrf.mxu0 }
 0x18b   :  { %v620_v29 = vpop.f32.mrf.mxu1  ;;  %v2610_v21 = vadd.f32 %v2442_v42, %v258_v25  ;;  %v1044_v25 = vld [vmem:[#allocation4 + $0x50] sm:$0xff] }
 0x18c   :  { %v621_v31 = vadd.f32 %v2319_v26, %v620_v29  ;;  %v700_v29 = vadd.f32 %v2342_v47, %v2377_v15  ;;  %v585_v15 = vadd.f32 %v2319_v26, %v2383_v17  ;;  %v576_v17 = vadd.f32 %v2319_v26, %v2332_v40  ;;  %v1036_v26 = vld [vmem:[#allocation4 + $0x10] sm:$0xff] }
 0x18e   :  { %816 = vmatmul.f32.gmra.mxu3 %v2529_v46  ;;  %889 = vmatpush.xpose.msrb.mxu0 %v621_v31  ;;  %v2602_v31 = vadd.f32 %v2442_v42, %v255_v61 }
 0x191   :  { %v738_v36 = vpop.f32.mrf.mxu2 }
 0x192   :  { %890 = vmatpush.xpose.msrb.mxu0 %v618_v43  ;;  %v739_v2 = vadd.f32 %v2342_v47, %v738_v36  ;;  %v261_v59 = vpop.f32.mrf.mxu0  ;;  %v1034_v43 = vld [vmem:[#allocation4] sm:$0xff] }
 0x193   :  { %v2618_v34 = vadd.f32 %v2442_v42, %v261_v59 }
 0x196   :  { %819 = vmatmul.f32.gmra.mxu3 %v2539_v33  ;;  %891 = vmatpush.xpose.msrb.mxu0 %v615_v63 }
 0x199   :  { %v741_v10 = vpop.f32.mrf.mxu2 }
 0x19a   :  { %v742_v14 = vadd.f32 %v2342_v47, %v741_v10  ;;  %892 = vmatpush.xpose.msrb.mxu0 %v612_v3  ;;  %v264_v19 = vpop.f32.mrf.mxu0  ;;  %v1038_v10 = vld [vmem:[#allocation4 + $0x20] sm:$0xff] }
 0x19b   :  { %v2623_v56 = vadd.f32 %v2442_v42, %v264_v19 }
 0x19c   :  { %1275 = vmatpush.msra.mxu2 %v742_v14 }
 0x19e   :  { %822 = vmatmul.f32.gmra.mxu3 %v2546_v9  ;;  %893 = vmatpush.xpose.msrb.mxu0 %v609_v18  ;;  %v1040_v18 = vld [vmem:[#allocation4 + $0x30] sm:$0xff] }
 0x19f   :  { %1276 = vmatpush.msra.mxu2 %v739_v2 }
 0x1a1   :  { %1277 = vmatpush.msra.mxu2 %v736_v53 }
 0x1a2   :  { %894 = vmatpush.xpose.msrb.mxu0 %v606_v49  ;;  %v267_v47 = vpop.f32.mrf.mxu0 }
 0x1a3   :  { %1278 = vmatpush.msra.mxu2 %v733_v62 }
 0x1a5   :  { %1279 = vmatpush.msra.mxu2 %v730_v58  ;;  %v1042_v58 = vld [vmem:[#allocation4 + $0x40] sm:$0xff] }
 0x1a6   :  { %825 = vmatmul.f32.gmra.mxu3 %v2557_v24  ;;  %895 = vmatpush.xpose.msrb.mxu0 %v603_v50 }
 0x1a7   :  { %1280 = vmatpush.msra.mxu2 %v727_v16 }
 0x1a9   :  { %1281 = vmatpush.msra.mxu2 %v724_v22 }
 0x1aa   :  { %896 = vmatpush.xpose.msrb.mxu0 %v600_v57  ;;  %v270_v11 = vpop.f32.mrf.mxu0 }
 0x1ab   :  { %1282 = vmatpush.msra.mxu2 %v721_v12 }
 0x1ad   :  { %1283 = vmatpush.msra.mxu2 %v718_v5 }
 0x1ae   :  { %828 = vmatmul.f32.gmra.mxu3 %v2572_v0  ;;  %897 = vmatpush.xpose.msrb.mxu0 %v597_v23 }
 0x1af   :  { %1284 = vmatpush.msra.mxu2 %v715_v6 }
 0x1b1   :  { %1285 = vmatpush.msra.mxu2 %v712_v7 }
 0x1b2   :  { %898 = vmatpush.xpose.msrb.mxu0 %v594_v27  ;;  %v273_v40 = vpop.f32.mrf.mxu0 }
 0x1b3   :  { %1286 = vmatpush.msra.mxu2 %v709_v52  ;;  %v2638_v49 = vadd.f32 %v2442_v42, %v273_v40  ;;  %v1048_v52 = vld [vmem:[#allocation4 + $0x70] sm:$0xff] }
 0x1b5   :  { %1287 = vmatpush.msra.mxu2 %v706_v48 }
 0x1b6   :  { %831 = vmatmul.f32.gmra.mxu3 %v2588_v44  ;;  %899 = vmatpush.xpose.msrb.mxu0 %v591_v38 }
 0x1b7   :  { %1288 = vmatpush.msra.mxu2 %v703_v39  ;;  %v1050_v39 = vld [vmem:[#allocation4 + $0x80] sm:$0xff] }
 0x1b9   :  { %1289 = vmatpush.msra.mxu2 %v700_v29 }
 0x1ba   :  { %900 = vmatpush.xpose.msrb.mxu0 %v588_v54  ;;  %v276_v2 = vpop.f32.mrf.mxu0 }
 0x1bb   :  { %1290 = vmatpush.msra.mxu2 %v697_v28  ;;  %v2643_v22 = vadd.f32 %v2442_v42, %v276_v2  ;;  %v1052_v28 = vld [vmem:[#allocation4 + $0x90] sm:$0xff]  ;;  %v1062_v2 = vld [vmem:[#allocation4 + $0xe0] sm:$0xff] }
 0x1be   :  { %834 = vmatmul.f32.gmra.mxu3 %v2602_v31  ;;  %901 = vmatpush.xpose.msrb.mxu0 %v585_v15 }
 0x1c2   :  { %902 = vmatpush.xpose.msrb.mxu0 %v582_v41 }
 0x1c6   :  { %837 = vmatmul.f32.gmra.mxu3 %v2610_v21  ;;  %903 = vmatpush.xpose.msrb.mxu0 %v579_v4 }
 0x1ca   :  { %904 = vmatpush.xpose.msrb.mxu0 %v576_v17 }
 0x1cd   :  { %905 = vmatmul.f32.vlgmr.msrb.gmra.mxu0 %v2449_v37  ;;  %v2628_v37 = vadd.f32 %v2442_v42, %v267_v47  ;;  %v1054_v47 = vld [vmem:[#allocation4 + $0xa0] sm:$0xff] }
 0x1ce   :  { %840 = vmatmul.f32.gmra.mxu3 %v2618_v34 }
 0x1d1   :  { %v793_v36 = vpop.f32.mrf.mxu3 }
 0x1d2   :  { %v1098_v55 = vmul.f32 %v1034_v43, %v793_v36 }
 0x1d4   :  { %1178 = vmatmul.f32.vlgmr.msra.gmra.mxu1 %v1098_v55 }
 0x1d5   :  { %908 = vmatmul.f32.gmra.mxu0 %v2461_v51  ;;  %v2633_v51 = vadd.f32 %v2442_v42, %v270_v11 }
 0x1d6   :  { %843 = vmatmul.f32.gmra.mxu3 %v2623_v56 }
 0x1d9   :  { %v796_v63 = vpop.f32.mrf.mxu3 }
 0x1da   :  { %v1100_v3 = vmul.f32 %v1036_v26, %v796_v63  ;;  %v1058_v26 = vld [vmem:[#allocation4 + $0xc0] sm:$0xff] }
 0x1dc   :  { %1181 = vmatmul.f32.gmra.mxu1 %v1100_v3  ;;  %v1060_v3 = vld [vmem:[#allocation4 + $0xd0] sm:$0xff] }
 0x1dd   :  { %911 = vmatmul.f32.gmra.mxu0 %v2473_v60  ;;  %v279_v60 = vpop.f32.mrf.mxu0 }
 0x1de   :  { %846 = vmatmul.f32.gmra.mxu3 %v2628_v37  ;;  %v2648_v5 = vadd.f32 %v2442_v42, %v279_v60 }
 0x1e1   :  { %v799_v14 = vpop.f32.mrf.mxu3 }
 0x1e2   :  { %v1102_v61 = vmul.f32 %v1038_v10, %v799_v14 }
 0x1e4   :  { %1184 = vmatmul.f32.gmra.mxu1 %v1102_v61 }
 0x1e5   :  { %914 = vmatmul.f32.gmra.mxu0 %v2485_v8  ;;  %v282_v8 = vpop.f32.mrf.mxu0 }
 0x1e6   :  { %849 = vmatmul.f32.gmra.mxu3 %v2633_v51 }
 0x1e9   :  { %v802_v53 = vpop.f32.mrf.mxu3 }
 0x1ea   :  { %v1104_v62 = vmul.f32 %v1040_v18, %v802_v53  ;;  %v1064_v18 = vld [vmem:[#allocation4 + $0xf0] sm:$0xff] }
 0x1ec   :  { %1187 = vmatmul.f32.gmra.mxu1 %v1104_v62 }
 0x1ed   :  { %917 = vmatmul.f32.gmra.mxu0 %v2497_v13  ;;  %v1046_v13 = vld [vmem:[#allocation4 + $0x60] sm:$0xff]  ;;  %v285_v6 = vpop.f32.mrf.mxu0 }
 0x1ee   :  { %852 = vmatmul.f32.gmra.mxu3 %v2638_v49 }
 0x1f1   :  { %v805_v16 = vpop.f32.mrf.mxu3 }
 0x1f2   :  { %v1106_v50 = vmul.f32 %v1042_v58, %v805_v16  ;;  %v1066_v58 = vld [vmem:[#allocation4 + $0x100] sm:$0xff]  ;;  %v1037_v16 = vld [vmem:[#allocation4 + $0x18] sm:$0xff] }
 0x1f4   :  { %1190 = vmatmul.f32.gmra.mxu1 %v1106_v50 }
 0x1f5   :  { %920 = vmatmul.f32.gmra.mxu0 %v2505_v1  ;;  %v2653_v1 = vadd.f32 %v2442_v42, %v282_v8  ;;  %v288_v27 = vpop.f32.mrf.mxu0 }
 0x1f6   :  { %855 = vmatmul.f32.gmra.mxu3 %v2643_v22  ;;  %v2663_v54 = vadd.f32 %v2442_v42, %v288_v27 }
 0x1f9   :  { %v808_v12 = vpop.f32.mrf.mxu3 }
 0x1fa   :  { %v1108_v57 = vmul.f32 %v1044_v25, %v808_v12  ;;  %v1039_v25 = vld [vmem:[#allocation4 + $0x28] sm:$0xff] }
 0x1fc   :  { %1193 = vmatmul.f32.gmra.mxu1 %v1108_v57 }
 0x1fd   :  { %923 = vmatmul.f32.gmra.mxu0 %v2513_v20  ;;  %v2658_v20 = vadd.f32 %v2442_v42, %v285_v6 }
 0x1fe   :  { %858 = vmatmul.f32.gmra.mxu3 %v2648_v5 }
 0x201   :  { %v811_v23 = vpop.f32.mrf.mxu3 }
 0x202   :  { %v1110_v7 = vmul.f32 %v1046_v13, %v811_v23  ;;  %v1041_v23 = vld [vmem:[#allocation4 + $0x38] sm:$0xff] }
 0x204   :  { %1196 = vmatmul.f32.gmra.mxu1 %v1110_v7 }
 0x205   :  { %926 = vmatmul.f32.gmra.mxu0 %v2521_v45  ;;  %v291_v45 = vpop.f32.mrf.mxu0 }
 0x206   :  { %861 = vmatmul.f32.gmra.mxu3 %v2653_v1  ;;  %v2668_v41 = vadd.f32 %v2442_v42, %v291_v45 }
 0x209   :  { %v814_v59 = vpop.f32.mrf.mxu3 }
 0x20a   :  { %v1112_v48 = vmul.f32 %v1048_v52, %v814_v59 }
 0x20c   :  { %1199 = vmatmul.f32.gmra.mxu1 %v1112_v48  ;;  %v1043_v48 = vld [vmem:[#allocation4 + $0x48] sm:$0xff] }
 0x20d   :  { %929 = vmatmul.f32.gmra.mxu0 %v2529_v46  ;;  %v294_v46 = vpop.f32.mrf.mxu0 }
 0x20e   :  { %864 = vmatmul.f32.gmra.mxu3 %v2658_v20  ;;  %v2673_v11 = vadd.f32 %v2442_v42, %v294_v46 }
 0x211   :  { %v817_v38 = vpop.f32.mrf.mxu3 }
 0x212   :  { %v1114_v29 = vmul.f32 %v1050_v39, %v817_v38 }
 0x214   :  { %1202 = vmatmul.f32.gmra.mxu1 %v1114_v29 }
 0x215   :  { %932 = vmatmul.f32.gmra.mxu0 %v2539_v33  ;;  %v1056_v33 = vld [vmem:[#allocation4 + $0xb0] sm:$0xff]  ;;  %v297_v43 = vpop.f32.mrf.mxu0 }
 0x216   :  { %867 = vmatmul.f32.gmra.mxu3 %v2663_v54 }
 0x219   :  { %v820_v19 = vpop.f32.mrf.mxu3 }
 0x21a   :  { %v1116_v15 = vmul.f32 %v1052_v28, %v820_v19  ;;  %v1045_v28 = vld [vmem:[#allocation4 + $0x58] sm:$0xff] }
 0x21c   :  { %1205 = vmatmul.f32.gmra.mxu1 %v1116_v15 }
 0x21d   :  { %935 = vmatmul.f32.gmra.mxu0 %v2546_v9  ;;  %v2678_v9 = vadd.f32 %v2442_v42, %v297_v43 }
 0x21e   :  { %870 = vmatmul.f32.gmra.mxu3 %v2668_v41 }
 0x221   :  { %v823_v4 = vpop.f32.mrf.mxu3 }
 0x222   :  { %v1118_v17 = vmul.f32 %v1054_v47, %v823_v4  ;;  %v1047_v4 = vld [vmem:[#allocation4 + $0x68] sm:$0xff] }
 0x224   :  { %1208 = vmatmul.f32.gmra.mxu1 %v1118_v17 }
 0x225   :  { %938 = vmatmul.f32.gmra.mxu0 %v2557_v24  ;;  %v2684_v24 = vadd.f32 %v2442_v42, %v2140_v30 }
 0x226   :  { %873 = vmatmul.f32.gmra.mxu3 %v2673_v11 }
 0x229   :  { %v826_v36 = vpop.f32.mrf.mxu3 }
 0x22a   :  { %v1120_v55 = vmul.f32 %v1056_v33, %v826_v36 }
 0x22c   :  { %1211 = vmatmul.f32.gmra.mxu1 %v1120_v55  ;;  %v1049_v55 = vld [vmem:[#allocation4 + $0x78] sm:$0xff] }
 0x22d   :  { %941 = vmatmul.f32.gmra.mxu0 %v2572_v0  ;;  %v2690_v0 = vadd.f32 %v2442_v42, %v2147_v32  ;;  %v1035_v32 = vld [vmem:[#allocation4 + $0x8] sm:$0xff] }
 0x22e   :  { %876 = vmatmul.f32.gmra.mxu3 %v2678_v9 }
 0x231   :  { %v829_v40 = vpop.f32.mrf.mxu3 }
 0x232   :  { %v1122_v63 = vmul.f32 %v1058_v26, %v829_v40 }
 0x234   :  { %1214 = vmatmul.f32.gmra.mxu1 %v1122_v63 }
 0x235   :  { %944 = vmatmul.f32.gmra.mxu0 %v2588_v44  ;;  %v2696_v44 = vadd.f32 %v2442_v42, %v2156_v35 }
 0x236   :  { %879 = vmatmul.f32.gmra.mxu3 %v2684_v24 }
 0x239   :  { %v832_v10 = vpop.f32.mrf.mxu3 }
 0x23a   :  { %v1124_v14 = vmul.f32 %v1060_v3, %v832_v10 }
 0x23c   :  { %1217 = vmatmul.f32.gmra.mxu1 %v1124_v14  ;;  %v1051_v14 = vld [vmem:[#allocation4 + $0x88] sm:$0xff] }
 0x23d   :  { %947 = vmatmul.f32.gmra.mxu0 %v2602_v31 }
 0x23e   :  { %882 = vmatmul.f32.gmra.mxu3 %v2690_v0 }
 0x241   :  { %v835_v30 = vpop.f32.mrf.mxu3 }
 0x242   :  { %v1126_v61 = vmul.f32 %v1062_v2, %v835_v30 }
 0x244   :  { %1220 = vmatmul.f32.gmra.mxu1 %v1126_v61 }
 0x245   :  { %950 = vmatmul.f32.gmra.mxu0 %v2610_v21  ;;  %v1068_v21 = vld [vmem:[#allocation4 + $0x110] sm:$0xff] }
 0x246   :  { %885 = vmatmul.f32.gmra.mxu3 %v2696_v44 }
 0x249   :  { %v838_v53 = vpop.f32.mrf.mxu3 }
 0x24a   :  { %v1128_v62 = vmul.f32 %v1064_v18, %v838_v53  ;;  %v906_v60 = vpop.f32.mrf.mxu0 }
 0x24b   :  { %v1099_v31 = vmul.f32 %v1035_v32, %v906_v60  ;;  %v1082_v32 = vld [vmem:[#allocation4 + $0x180] sm:$0xff] }
 0x24c   :  { %1223 = vmatmul.f32.gmra.mxu1 %v1128_v62  ;;  %v1053_v62 = vld [vmem:[#allocation4 + $0x98] sm:$0xff] }
 0x24d   :  { %953 = vmatmul.f32.gmra.mxu0 %v2618_v34  ;;  %1291 = vmatmul.f32.vlgmr.msra.gmra.mxu2 %v1099_v31  ;;  %v1070_v34 = vld [vmem:[#allocation4 + $0x120] sm:$0xff] }
 0x251   :  { %v841_v50 = vpop.f32.mrf.mxu3  ;;  %v2711_v10 = vpop.f32.mrf.mxu1 }
 0x252   :  { %v1130_v35 = vmul.f32 %v1066_v58, %v841_v50  ;;  %v909_v42 = vpop.f32.mrf.mxu0  ;;  %v1055_v50 = vld [vmem:[#allocation4 + $0xa8] sm:$0xff] }
 0x253   :  { %v1101_v8 = vmul.f32 %v1037_v16, %v909_v42  ;;  %v1501_v16 = vld [vmem:[%s2834_s9 + $0x70] sm:$0xff] }
 0x254   :  { %1226 = vmatmul.f32.gmra.mxu1 %v1130_v35  ;;  %v1500_v35 = vld [vmem:[%s2834_s9 + $0x68] sm:$0xff] }
 0x255   :  { %956 = vmatmul.f32.gmra.mxu0 %v2623_v56  ;;  %1294 = vmatmul.f32.gmra.mxu2 %v1101_v8  ;;  %v1072_v56 = vld [vmem:[#allocation4 + $0x130] sm:$0xff] }
 0x259   :  { %v844_v12 = vpop.f32.mrf.mxu3  ;;  %v2714_v53 = vpop.f32.mrf.mxu1 }
 0x25a   :  { %v1132_v57 = vmul.f32 %v1068_v21, %v844_v12  ;;  %v912_v13 = vpop.f32.mrf.mxu0 }
 0x25b   :  { %v1103_v6 = vmul.f32 %v1039_v25, %v912_v13  ;;  %v1497_v13 = vld [vmem:[%s2834_s9 + $0x50] sm:$0xff] }
 0x25c   :  { %1229 = vmatmul.f32.gmra.mxu1 %v1132_v57  ;;  %v1498_v57 = vld [vmem:[%s2834_s9 + $0x58] sm:$0xff] }
 0x25d   :  { %959 = vmatmul.f32.gmra.mxu0 %v2628_v37  ;;  %1297 = vmatmul.f32.gmra.mxu2 %v1103_v6  ;;  %v1074_v37 = vld [vmem:[#allocation4 + $0x140] sm:$0xff] }
 0x25e   :  { %v1086_v6 = vld [vmem:[#allocation4 + $0x1a0] sm:$0xff] }
 0x261   :  { %v847_v7 = vpop.f32.mrf.mxu3  ;;  %v2723_v8 = vpop.f32.mrf.mxu1 }
 0x262   :  { %v1134_v52 = vmul.f32 %v1070_v34, %v847_v7  ;;  %v915_v59 = vpop.f32.mrf.mxu0  ;;  %v1057_v34 = vld [vmem:[#allocation4 + $0xb8] sm:$0xff] }
 0x263   :  { %v1105_v27 = vmul.f32 %v1041_v23, %v915_v59  ;;  %v1496_v23 = vld [vmem:[%s2834_s9 + $0x48] sm:$0xff] }
 0x264   :  { %1232 = vmatmul.f32.gmra.mxu1 %v1134_v52 }
 0x265   :  { %962 = vmatmul.f32.gmra.mxu0 %v2633_v51  ;;  %1300 = vmatmul.f32.gmra.mxu2 %v1105_v27  ;;  %v1076_v51 = vld [vmem:[#allocation4 + $0x150] sm:$0xff]  ;;  %v1495_v27 = vld [vmem:[%s2834_s9 + $0x40] sm:$0xff] }
 0x269   :  { %v850_v39 = vpop.f32.mrf.mxu3 }
 0x26a   :  { %v1136_v38 = vmul.f32 %v1072_v56, %v850_v39  ;;  %v918_v29 = vpop.f32.mrf.mxu0  ;;  %v2741_v56 = vpop.f32.mrf.mxu1  ;;  %v1088_v39 = vld [vmem:[#allocation4 + $0x1b0] sm:$0xff] }
 0x26b   :  { %v1107_v45 = vmul.f32 %v1043_v48, %v918_v29  ;;  %v1494_v48 = vld [vmem:[%s2834_s9 + $0x38] sm:$0xff]  ;;  %v1059_v29 = vld [vmem:[#allocation4 + $0xc8] sm:$0xff] }
 0x26c   :  { %1235 = vmatmul.f32.gmra.mxu1 %v1136_v38  ;;  %v1493_v38 = vld [vmem:[%s2834_s9 + $0x30] sm:$0xff] }
 0x26d   :  { %965 = vmatmul.f32.gmra.mxu0 %v2638_v49  ;;  %1303 = vmatmul.f32.gmra.mxu2 %v1107_v45  ;;  %v1078_v49 = vld [vmem:[#allocation4 + $0x160] sm:$0xff] }
 0x271   :  { %v853_v19 = vpop.f32.mrf.mxu3 }
 0x272   :  { %v1138_v15 = vmul.f32 %v1074_v37, %v853_v19  ;;  %v921_v46 = vpop.f32.mrf.mxu0 }
 0x273   :  { %v1109_v47 = vmul.f32 %v1045_v28, %v921_v46  ;;  %v1490_v46 = vld [vmem:[%s2834_s9 + $0x18] sm:$0xff] }
 0x274   :  { %1238 = vmatmul.f32.gmra.mxu1 %v1138_v15  ;;  %v1491_v15 = vld [vmem:[%s2834_s9 + $0x20] sm:$0xff] }
 0x275   :  { %968 = vmatmul.f32.gmra.mxu0 %v2643_v22  ;;  %1306 = vmatmul.f32.gmra.mxu2 %v1109_v47  ;;  %v1502_v22 = vld [vmem:[%s2834_s9 + $0x78] sm:$0xff]  ;;  %v2760_v47 = vpop.f32.mrf.mxu1 }
 0x276   :  { %1871 = vmatpush.msrb.mxu3 %v1502_v22  ;;  %1507 = vmatpush.msra.mxu0 %v1502_v22 }
 0x278   :  { %1872 = vmatpush.msrb.mxu3 %v1501_v16  ;;  %1508 = vmatpush.msra.mxu0 %v1501_v16 }
 0x279   :  { %v856_v17 = vpop.f32.mrf.mxu3 }
 0x27a   :  { %v1140_v33 = vmul.f32 %v1076_v51, %v856_v17  ;;  %v924_v43 = vpop.f32.mrf.mxu0  ;;  %1873 = vmatpush.msrb.mxu3 %v1500_v35  ;;  %1509 = vmatpush.msra.mxu0 %v1500_v35  ;;  %v1090_v51 = vld [vmem:[#allocation4 + $0x1c0] sm:$0xff]  ;;  %v1061_v17 = vld [vmem:[#allocation4 + $0xd8] sm:$0xff] }
 0x27b   :  { %v1111_v36 = vmul.f32 %v1047_v4, %v924_v43  ;;  %v1489_v4 = vld [vmem:[%s2834_s9 + $0x10] sm:$0xff]  ;;  %v1069_v35 = vld [vmem:[#allocation4 + $0x118] sm:$0xff] }
 0x27c   :  { %1241 = vmatmul.f32.gmra.mxu1 %v1140_v33 }
 0x27d   :  { %971 = vmatmul.f32.gmra.mxu0 %v2648_v5  ;;  %1309 = vmatmul.f32.gmra.mxu2 %v1111_v36  ;;  %v1080_v5 = vld [vmem:[#allocation4 + $0x170] sm:$0xff] }
 0x281   :  { %v859_v26 = vpop.f32.mrf.mxu3 }
 0x282   :  { %v1142_v40 = vmul.f32 %v1078_v49, %v859_v26  ;;  %v927_v63 = vpop.f32.mrf.mxu0  ;;  %v1092_v26 = vld [vmem:[#allocation4 + $0x1d0] sm:$0xff] }
 0x283   :  { %v1113_v3 = vmul.f32 %v1049_v55, %v927_v63  ;;  %v1487_v55 = vld [vmem:[%s2834_s9] sm:$0xff]  ;;  %v1063_v63 = vld [vmem:[#allocation4 + $0xe8] sm:$0xff] }
 0x284   :  { %1244 = vmatmul.f32.gmra.mxu1 %v1142_v40  ;;  %v2772_v40 = vpop.f32.mrf.mxu1 }
 0x285   :  { %974 = vmatmul.f32.gmra.mxu0 %v2653_v1  ;;  %1312 = vmatmul.f32.gmra.mxu2 %v1113_v3 }
 0x289   :  { %v862_v2 = vpop.f32.mrf.mxu3 }
 0x28a   :  { %v1144_v30 = vmul.f32 %v1080_v5, %v862_v2  ;;  %v930_v61 = vpop.f32.mrf.mxu0  ;;  %v1094_v2 = vld [vmem:[#allocation4 + $0x1e0] sm:$0xff] }
 0x28b   :  { %v1115_v18 = vmul.f32 %v1051_v14, %v930_v61 }
 0x28c   :  { %1247 = vmatmul.f32.gmra.mxu1 %v1144_v30  ;;  %v1065_v30 = vld [vmem:[#allocation4 + $0xf8] sm:$0xff] }
 0x28d   :  { %977 = vmatmul.f32.gmra.mxu0 %v2658_v20  ;;  %1315 = vmatmul.f32.gmra.mxu2 %v1115_v18  ;;  %v1084_v20 = vld [vmem:[#allocation4 + $0x190] sm:$0xff] }
 0x291   :  { %v865_v1 = vpop.f32.mrf.mxu3 }
 0x292   :  { %v1146_v60 = vmul.f32 %v1082_v32, %v865_v1  ;;  %v933_v31 = vpop.f32.mrf.mxu0  ;;  %v1096_v1 = vld [vmem:[#allocation4 + $0x1f0] sm:$0xff] }
 0x293   :  { %v1117_v58 = vmul.f32 %v1053_v62, %v933_v31 }
 0x294   :  { %1250 = vmatmul.f32.gmra.mxu1 %v1146_v60  ;;  %v1067_v60 = vld [vmem:[#allocation4 + $0x108] sm:$0xff] }
 0x295   :  { %980 = vmatmul.f32.gmra.mxu0 %v2663_v54  ;;  %1318 = vmatmul.f32.gmra.mxu2 %v1117_v58  ;;  %v1499_v54 = vld [vmem:[%s2834_s9 + $0x60] sm:$0xff] }
 0x296   :  { %1874 = vmatpush.msrb.mxu3 %v1499_v54  ;;  %1510 = vmatpush.msra.mxu0 %v1499_v54 }
 0x298   :  { %1875 = vmatpush.msrb.mxu3 %v1498_v57  ;;  %1511 = vmatpush.msra.mxu0 %v1498_v57 }
 0x299   :  { %v868_v42 = vpop.f32.mrf.mxu3 }
 0x29a   :  { %v1148_v21 = vmul.f32 %v1084_v20, %v868_v42  ;;  %v936_v25 = vpop.f32.mrf.mxu0  ;;  %1876 = vmatpush.msrb.mxu3 %v1497_v13  ;;  %1512 = vmatpush.msra.mxu0 %v1497_v13 }
 0x29b   :  { %v1119_v12 = vmul.f32 %v1055_v50, %v936_v25 }
 0x29c   :  { %1253 = vmatmul.f32.gmra.mxu1 %v1148_v21  ;;  %1877 = vmatpush.msrb.mxu3 %v1496_v23 }
 0x29d   :  { %983 = vmatmul.f32.gmra.mxu0 %v2668_v41  ;;  %1321 = vmatmul.f32.gmra.mxu2 %v1119_v12 }
 0x29e   :  { %1513 = vmatpush.msra.mxu0 %v1496_v23  ;;  %1878 = vmatpush.msrb.mxu3 %v1495_v27 }
 0x2a0   :  { %1879 = vmatpush.msrb.mxu3 %v1494_v48  ;;  %1514 = vmatpush.msra.mxu0 %v1495_v27 }
 0x2a1   :  { %v871_v7 = vpop.f32.mrf.mxu3 }
 0x2a2   :  { %v1150_v52 = vmul.f32 %v1086_v6, %v871_v7  ;;  %v939_v59 = vpop.f32.mrf.mxu0  ;;  %1880 = vmatpush.msrb.mxu3 %v1493_v38  ;;  %1515 = vmatpush.msra.mxu0 %v1494_v48 }
 0x2a3   :  { %v1121_v41 = vmul.f32 %v1057_v34, %v939_v59  ;;  %v1073_v34 = vld [vmem:[#allocation4 + $0x138] sm:$0xff] }
 0x2a4   :  { %1256 = vmatmul.f32.gmra.mxu1 %v1150_v52  ;;  %1516 = vmatpush.msra.mxu0 %v1493_v38 }
 0x2a5   :  { %986 = vmatmul.f32.gmra.mxu0 %v2673_v11  ;;  %1324 = vmatmul.f32.gmra.mxu2 %v1121_v41  ;;  %v1492_v11 = vld [vmem:[%s2834_s9 + $0x28] sm:$0xff] }
 0x2a6   :  { %1881 = vmatpush.msrb.mxu3 %v1492_v11  ;;  %1517 = vmatpush.msra.mxu0 %v1492_v11  ;;  %v1075_v41 = vld [vmem:[#allocation4 + $0x148] sm:$0xff] }
 0x2a8   :  { %1882 = vmatpush.msrb.mxu3 %v1491_v15  ;;  %1518 = vmatpush.msra.mxu0 %v1491_v15 }
 0x2a9   :  { %v874_v45 = vpop.f32.mrf.mxu3 }
 0x2aa   :  { %v1152_v37 = vmul.f32 %v1088_v39, %v874_v45  ;;  %v942_v28 = vpop.f32.mrf.mxu0  ;;  %1883 = vmatpush.msrb.mxu3 %v1490_v46  ;;  %1519 = vmatpush.msra.mxu0 %v1490_v46 }
 0x2ab   :  { %v1123_v19 = vmul.f32 %v1059_v29, %v942_v28  ;;  %v1077_v29 = vld [vmem:[#allocation4 + $0x158] sm:$0xff] }
 0x2ac   :  { %1259 = vmatmul.f32.gmra.mxu1 %v1152_v37  ;;  %1884 = vmatpush.msrb.mxu3 %v1489_v4 }
 0x2ad   :  { %989 = vmatmul.f32.gmra.mxu0 %v2678_v9  ;;  %1327 = vmatmul.f32.gmra.mxu2 %v1123_v19  ;;  %v1488_v9 = vld [vmem:[%s2834_s9 + $0x8] sm:$0xff] }
 0x2ae   :  { %1885 = vmatpush.msrb.mxu3 %v1488_v9  ;;  %1520 = vmatpush.msra.mxu0 %v1489_v4  ;;  %v1079_v19 = vld [vmem:[#allocation4 + $0x168] sm:$0xff] }
 0x2b0   :  { %1886 = vmatpush.msrb.mxu3 %v1487_v55  ;;  %1521 = vmatpush.msra.mxu0 %v1488_v9 }
 0x2b1   :  { %v877_v33 = vpop.f32.mrf.mxu3 }
 0x2b2   :  { %v1154_v43 = vmul.f32 %v1090_v51, %v877_v33  ;;  %v945_v36 = vpop.f32.mrf.mxu0  ;;  %1522 = vmatpush.msra.mxu0 %v1487_v55 }
 0x2b3   :  { %v1125_v49 = vmul.f32 %v1061_v17, %v945_v36  ;;  %v1081_v17 = vld [vmem:[#allocation4 + $0x178] sm:$0xff]  ;;  %v1083_v36 = vld [vmem:[#allocation4 + $0x188] sm:$0xff] }
 0x2b4   :  { %1262 = vmatmul.f32.gmra.mxu1 %v1154_v43 }
 0x2b5   :  { %992 = vmatmul.f32.gmra.mxu0 %v2684_v24  ;;  %1330 = vmatmul.f32.gmra.mxu2 %v1125_v49  ;;  %v2775_v24 = vpop.f32.mrf.mxu1 }
 0x2b9   :  { %v880_v3 = vpop.f32.mrf.mxu3 }
 0x2ba   :  { %v1156_v22 = vmul.f32 %v1092_v26, %v880_v3  ;;  %v948_v5 = vpop.f32.mrf.mxu0  ;;  %v1085_v3 = vld [vmem:[#allocation4 + $0x198] sm:$0xff] }
 0x2bb   :  { %v1127_v14 = vmul.f32 %v1063_v63, %v948_v5 }
 0x2bc   :  { %1265 = vmatmul.f32.gmra.mxu1 %v1156_v22 }
 0x2bd   :  { %995 = vmatmul.f32.gmra.mxu0 %v2690_v0  ;;  %1333 = vmatmul.f32.gmra.mxu2 %v1127_v14  ;;  %v1200_v0 = vpop.f32.mrf.mxu1 }
 0x2c1   :  { %v883_v61 = vpop.f32.mrf.mxu3 }
 0x2c2   :  { %v1158_v18 = vmul.f32 %v1094_v2, %v883_v61  ;;  %v951_v32 = vpop.f32.mrf.mxu0  ;;  %v1087_v61 = vld [vmem:[#allocation4 + $0x1a8] sm:$0xff] }
 0x2c3   :  { %v1129_v62 = vmul.f32 %v1065_v30, %v951_v32 }
 0x2c4   :  { %1268 = vmatmul.f32.gmra.mxu1 %v1158_v18 }
 0x2c5   :  { %998 = vmatmul.f32.gmra.mxu0 %v2696_v44  ;;  %1336 = vmatmul.f32.gmra.mxu2 %v1129_v62  ;;  %v1071_v44 = vld [vmem:[#allocation4 + $0x128] sm:$0xff]  ;;  %v1203_v23 = vpop.f32.mrf.mxu1 }
 0x2c9   :  { %v886_v31 = vpop.f32.mrf.mxu3 }
 0x2ca   :  { %v1160_v58 = vmul.f32 %v1096_v1, %v886_v31  ;;  %v954_v16 = vpop.f32.mrf.mxu0 }
 0x2cb   :  { %v1131_v20 = vmul.f32 %v1067_v60, %v954_v16  ;;  %v1089_v60 = vld [vmem:[#allocation4 + $0x1b8] sm:$0xff] }
 0x2cc   :  { %1271 = vmatmul.f32.gmra.mxu1 %v1160_v58 }
 0x2cd   :  { %1339 = vmatmul.f32.gmra.mxu2 %v1131_v20  ;;  %v1206_v39 = vpop.f32.mrf.mxu1 }
 0x2d0   :  { %v1292_v50 = vpop.f32.mrf.mxu2 }
 0x2d1   :  { %v1293_v42 = vadd.f32 %v1292_v50, %v2711_v10  ;;  %v1091_v50 = vld [vmem:[#allocation4 + $0x1c8] sm:$0xff] }
 0x2d2   :  { %v957_v21 = vpop.f32.mrf.mxu0 }
 0x2d3   :  { %v1133_v25 = vmul.f32 %v1069_v35, %v957_v21  ;;  %1523 = vmatmul.f32.vlgmr.msra.gmra.mxu0 %v1293_v42 }
 0x2d5   :  { %1342 = vmatmul.f32.gmra.mxu2 %v1133_v25 }
 0x2d8   :  { %v1295_v54 = vpop.f32.mrf.mxu2 }
 0x2d9   :  { %v1296_v12 = vadd.f32 %v1295_v54, %v2714_v53  ;;  %v1093_v54 = vld [vmem:[#allocation4 + $0x1d8] sm:$0xff] }
 0x2da   :  { %v960_v57 = vpop.f32.mrf.mxu0 }
 0x2db   :  { %v1135_v13 = vmul.f32 %v1071_v44, %v960_v57  ;;  %1526 = vmatmul.f32.gmra.mxu0 %v1296_v12 }
 0x2dd   :  { %1345 = vmatmul.f32.gmra.mxu2 %v1135_v13 }
 0x2e0   :  { %v1298_v6 = vpop.f32.mrf.mxu2 }
 0x2e1   :  { %v1299_v7 = vadd.f32 %v1298_v6, %v2723_v8  ;;  %v1209_v8 = vpop.f32.mrf.mxu1 }
 0x2e2   :  { %v963_v52 = vpop.f32.mrf.mxu0 }
 0x2e3   :  { %v1137_v59 = vmul.f32 %v1073_v34, %v963_v52  ;;  %1529 = vmatmul.f32.gmra.mxu0 %v1299_v7  ;;  %v1095_v34 = vld [vmem:[#allocation4 + $0x1e8] sm:$0xff] }
 0x2e5   :  { %1348 = vmatmul.f32.gmra.mxu2 %v1137_v59 }
 0x2e8   :  { %v1301_v10 = vpop.f32.mrf.mxu2 }
 0x2e9   :  { %v1302_v27 = vadd.f32 %v1301_v10, %v2741_v56  ;;  %v1212_v51 = vpop.f32.mrf.mxu1 }
 0x2ea   :  { %v966_v48 = vpop.f32.mrf.mxu0 }
 0x2eb   :  { %v1139_v53 = vmul.f32 %v1075_v41, %v966_v48  ;;  %1532 = vmatmul.f32.gmra.mxu0 %v1302_v27  ;;  %v1097_v41 = vld [vmem:[#allocation4 + $0x1f8] sm:$0xff] }
 0x2ed   :  { %1351 = vmatmul.f32.gmra.mxu2 %v1139_v53 }
 0x2f0   :  { %v1304_v38 = vpop.f32.mrf.mxu2 }
 0x2f1   :  { %v1305_v45 = vadd.f32 %v1304_v38, %v2760_v47  ;;  %v1215_v49 = vpop.f32.mrf.mxu1 }
 0x2f2   :  { %v969_v11 = vpop.f32.mrf.mxu0 }
 0x2f3   :  { %v1141_v37 = vmul.f32 %v1077_v29, %v969_v11  ;;  %1535 = vmatmul.f32.gmra.mxu0 %v1305_v45  ;;  %v2788_v45 = vld [vmem:[%s2835_s10] ss:$0 sm:$0xff]  ;;  %s1952_s10 = smov [#allocation7]  }
 0x2f4   :  { %s1752_s20 = sshll.u32 %s1952_s10, 4  ;;  %s1753_s20 = int_to_ptr.vmem [resolvable:$true] %s1752_s20 }
 0x2f5   :  { %1354 = vmatmul.f32.gmra.mxu2 %v1141_v37 }
 0x2f8   :  { %v1307_v28 = vpop.f32.mrf.mxu2 }
 0x2f9   :  { %v1308_v15 = vadd.f32 %v1307_v28, %v2772_v40  ;;  %v1218_v14 = vpop.f32.mrf.mxu1 }
 0x2fa   :  { %v972_v46 = vpop.f32.mrf.mxu0 }
 0x2fb   :  { %v1143_v56 = vmul.f32 %v1079_v19, %v972_v46  ;;  %1538 = vmatmul.f32.vlgmr.msrb.gmra.mxu3 %v1308_v15 }
 0x2fd   :  { %1357 = vmatmul.f32.gmra.mxu2 %v1143_v56 }
 0x300   :  { %v1310_v4 = vpop.f32.mrf.mxu2 }
 0x301   :  { %v1311_v33 = vadd.f32 %v1310_v4, %v2775_v24  ;;  %v1221_v62 = vpop.f32.mrf.mxu1 }
 0x302   :  { %v975_v9 = vpop.f32.mrf.mxu0 }
 0x303   :  { %v1145_v47 = vmul.f32 %v1081_v17, %v975_v9  ;;  %1541 = vmatmul.f32.gmra.mxu3 %v1311_v33 }
 0x305   :  { %1360 = vmatmul.f32.gmra.mxu2 %v1145_v47 }
 0x308   :  { %v1313_v43 = vpop.f32.mrf.mxu2 }
 0x309   :  { %v1314_v55 = vadd.f32 %v1313_v43, %v1200_v0  ;;  %v1224_v20 = vpop.f32.mrf.mxu1 }
 0x30a   :  { %v978_v26 = vpop.f32.mrf.mxu0 }
 0x30b   :  { %v1147_v63 = vmul.f32 %v1083_v36, %v978_v26  ;;  %1544 = vmatmul.f32.gmra.mxu3 %v1314_v55 }
 0x30d   :  { %1363 = vmatmul.f32.gmra.mxu2 %v1147_v63 }
 0x310   :  { %v1316_v40 = vpop.f32.mrf.mxu2 }
 0x311   :  { %v1317_v22 = vadd.f32 %v1316_v40, %v1203_v23  ;;  %v1227_v44 = vpop.f32.mrf.mxu1 }
 0x312   :  { %v981_v5 = vpop.f32.mrf.mxu0 }
 0x313   :  { %v1149_v2 = vmul.f32 %v1085_v3, %v981_v5  ;;  %1547 = vmatmul.f32.gmra.mxu3 %v1317_v22 }
 0x315   :  { %1366 = vmatmul.f32.gmra.mxu2 %v1149_v2 }
 0x318   :  { %v1319_v30 = vpop.f32.mrf.mxu2 }
 0x319   :  { %v1320_v24 = vadd.f32 %v1319_v30, %v1206_v39  ;;  %v1230_v52 = vpop.f32.mrf.mxu1 }
 0x31a   :  { %v984_v18 = vpop.f32.mrf.mxu0 }
 0x31b   :  { %v1151_v32 = vmul.f32 %v1087_v61, %v984_v18  ;;  %1550 = vmatmul.f32.gmra.mxu3 %v1320_v24 }
 0x31d   :  { %1369 = vmatmul.f32.gmra.mxu2 %v1151_v32 }
 0x320   :  { %v1322_v1 = vpop.f32.mrf.mxu2 }
 0x321   :  { %v1323_v31 = vadd.f32 %v1322_v1, %v1209_v8  ;;  %v1233_v53 = vpop.f32.mrf.mxu1 }
 0x322   :  { %v987_v58 = vpop.f32.mrf.mxu0 }
 0x323   :  { %v1153_v16 = vmul.f32 %v1089_v60, %v987_v58  ;;  %1553 = vmatmul.f32.gmra.mxu3 %v1323_v31 }
 0x325   :  { %1372 = vmatmul.f32.gmra.mxu2 %v1153_v16 }
 0x328   :  { %v1325_v0 = vpop.f32.mrf.mxu2 }
 0x329   :  { %v1326_v35 = vadd.f32 %v1325_v0, %v1212_v51  ;;  %v1236_v11 = vpop.f32.mrf.mxu1 }
 0x32a   :  { %v990_v42 = vpop.f32.mrf.mxu0 }
 0x32b   :  { %v1155_v21 = vmul.f32 %v1091_v50, %v990_v42  ;;  %1556 = vmatmul.f32.gmra.mxu3 %v1326_v35 }
 0x32d   :  { %1375 = vmatmul.f32.gmra.mxu2 %v1155_v21 }
 0x330   :  { %v1328_v25 = vpop.f32.mrf.mxu2 }
 0x331   :  { %v1329_v12 = vadd.f32 %v1328_v25, %v1215_v49  ;;  %v1239_v33 = vpop.f32.mrf.mxu1 }
 0x332   :  { %v993_v57 = vpop.f32.mrf.mxu0 }
 0x333   :  { %v1157_v13 = vmul.f32 %v1093_v54, %v993_v57  ;;  %1559 = vmatmul.f32.gmra.mxu3 %v1329_v12 }
 0x335   :  { %1378 = vmatmul.f32.gmra.mxu2 %v1157_v13 }
 0x338   :  { %v1331_v6 = vpop.f32.mrf.mxu2 }
 0x339   :  { %v1332_v23 = vadd.f32 %v1331_v6, %v1218_v14  ;;  %v1242_v63 = vpop.f32.mrf.mxu1 }
 0x33a   :  { %v996_v7 = vpop.f32.mrf.mxu0 }
 0x33b   :  { %v1159_v59 = vmul.f32 %v1095_v34, %v996_v7  ;;  %1562 = vmatmul.f32.gmra.mxu3 %v1332_v23 }
 0x33d   :  { %1381 = vmatmul.f32.gmra.mxu2 %v1159_v59 }
 0x340   :  { %v1334_v10 = vpop.f32.mrf.mxu2 }
 0x341   :  { %v1335_v27 = vadd.f32 %v1334_v10, %v1221_v62  ;;  %v1245_v61 = vpop.f32.mrf.mxu1 }
 0x342   :  { %v999_v48 = vpop.f32.mrf.mxu0 }
 0x343   :  { %v1161_v39 = vmul.f32 %v1097_v41, %v999_v48  ;;  %1565 = vmatmul.f32.gmra.mxu3 %v1335_v27 }
 0x345   :  { %1384 = vmatmul.f32.gmra.mxu2 %v1161_v39 }
 0x348   :  { %v1337_v38 = vpop.f32.mrf.mxu2 }
 0x349   :  { %v1338_v29 = vadd.f32 %v1337_v38, %v1224_v20  ;;  %v1248_v31 = vpop.f32.mrf.mxu1 }
 0x34b   :  { %1568 = vmatmul.f32.gmra.mxu3 %v1338_v29 }
 0x350   :  { %v1340_v37 = vpop.f32.mrf.mxu2  ;;  %v1524_v8 = vpop.f32.mrf.mxu0 }
 0x351   :  { %v1341_v28 = vadd.f32 %v1340_v37, %v1227_v44  ;;  %v1525_v19 = vadd.f32 %v2788_v45, %v1524_v8  ;;  %v1251_v21 = vpop.f32.mrf.mxu1 }
 0x353   :  { %1571 = vmatmul.f32.gmra.mxu3 %v1341_v28  ;;  %vm1620_vm1 = vcmp.ge.f32.partialorder %v1525_v19, 0.0  ;;  %v1652_v15 = vmul.f32 0.01, %v1525_v19 }
 0x355   :  { %v1684_v46 = vsel %vm1620_vm1, %v1525_v19, %v1652_v15 }
 0x356   :  { %1716 = vst [vmem:[#allocation7] sm:$0xff] %v1684_v46 }
 0x358   :  { %v1343_v56 = vpop.f32.mrf.mxu2  ;;  %v1527_v51 = vpop.f32.mrf.mxu0 }
 0x359   :  { %v1344_v4 = vadd.f32 %v1343_v56, %v1230_v52  ;;  %v1528_v17 = vadd.f32 %v2788_v45, %v1527_v51  ;;  %v1254_v34 = vpop.f32.mrf.mxu1 }
 0x35b   :  { %1574 = vmatmul.f32.gmra.mxu3 %v1344_v4  ;;  %vm1621_vm2 = vcmp.ge.f32.partialorder %v1528_v17, 0.0  ;;  %v1653_v9 = vmul.f32 0.01, %v1528_v17 }
 0x35d   :  { %v1685_v47 = vsel %vm1621_vm2, %v1528_v17, %v1653_v9 }
 0x35e   :  { %1717 = vst [vmem:[#allocation7 + $0x8] sm:$0xff] %v1685_v47 }
 0x360   :  { %v1346_v43 = vpop.f32.mrf.mxu2  ;;  %v1530_v36 = vpop.f32.mrf.mxu0 }
 0x361   :  { %v1347_v49 = vadd.f32 %v1346_v43, %v1233_v53  ;;  %v1531_v55 = vadd.f32 %v2788_v45, %v1530_v36  ;;  %v1257_v27 = vpop.f32.mrf.mxu1 }
 0x363   :  { %1577 = vmatmul.f32.gmra.mxu3 %v1347_v49  ;;  %vm1622_vm3 = vcmp.ge.f32.partialorder %v1531_v55, 0.0  ;;  %v1654_v26 = vmul.f32 0.01, %v1531_v55 }
 0x365   :  { %v1686_v40 = vsel %vm1622_vm3, %v1531_v55, %v1654_v26 }
 0x366   :  { %1718 = vst [vmem:[#allocation7 + $0x10] sm:$0xff] %v1686_v40 }
 0x368   :  { %v1349_v3 = vpop.f32.mrf.mxu2  ;;  %v1533_v22 = vpop.f32.mrf.mxu0 }
 0x369   :  { %v1350_v5 = vadd.f32 %v1349_v3, %v1236_v11  ;;  %v1534_v14 = vadd.f32 %v2788_v45, %v1533_v22  ;;  %v1260_v28 = vpop.f32.mrf.mxu1 }
 0x36b   :  { %1580 = vmatmul.f32.gmra.mxu3 %v1350_v5  ;;  %vm1623_vm4 = vcmp.ge.f32.partialorder %v1534_v14, 0.0  ;;  %v1655_v2 = vmul.f32 0.01, %v1534_v14 }
 0x36d   :  { %v1687_v30 = vsel %vm1623_vm4, %v1534_v14, %v1655_v2 }
 0x36e   :  { %1719 = vst [vmem:[#allocation7 + $0x18] sm:$0xff] %v1687_v30 }
 0x370   :  { %v1352_v24 = vpop.f32.mrf.mxu2  ;;  %v1536_v18 = vpop.f32.mrf.mxu0 }
 0x371   :  { %v1353_v32 = vadd.f32 %v1352_v24, %v1239_v33  ;;  %v1537_v62 = vadd.f32 %v2788_v45, %v1536_v18  ;;  %v1263_v47 = vpop.f32.mrf.mxu1 }
 0x373   :  { %1583 = vmatmul.f32.gmra.mxu3 %v1353_v32  ;;  %vm1624_vm5 = vcmp.ge.f32.partialorder %v1537_v62, 0.0  ;;  %v1656_v1 = vmul.f32 0.01, %v1537_v62 }
 0x375   :  { %v1688_v60 = vsel %vm1624_vm5, %v1537_v62, %v1656_v1 }
 0x376   :  { %1720 = vst [vmem:[#allocation7 + $0x20] sm:$0xff] %v1688_v60 }
 0x378   :  { %v1355_v58 = vpop.f32.mrf.mxu2 }
 0x379   :  { %v1356_v16 = vadd.f32 %v1355_v58, %v1242_v63  ;;  %v1266_v3 = vpop.f32.mrf.mxu1 }
 0x37b   :  { %1586 = vmatmul.f32.gmra.mxu3 %v1356_v16 }
 0x37e   :  { %v1539_v20 = vpop.f32.mrf.mxu3 }
 0x37f   :  { %v1540_v0 = vadd.f32 %v2788_v45, %v1539_v20 }
 0x380   :  { %v1358_v50 = vpop.f32.mrf.mxu2 }
 0x381   :  { %vm1625_vm6 = vcmp.ge.f32.partialorder %v1540_v0, 0.0  ;;  %v1657_v35 = vmul.f32 0.01, %v1540_v0  ;;  %v1359_v42 = vadd.f32 %v1358_v50, %v1245_v61  ;;  %v1269_v24 = vpop.f32.mrf.mxu1 }
 0x383   :  { %v1689_v25 = vsel %vm1625_vm6, %v1540_v0, %v1657_v35  ;;  %1589 = vmatmul.f32.gmra.mxu3 %v1359_v42 }
 0x384   :  { %1721 = vst [vmem:[#allocation7 + $0x28] sm:$0xff] %v1689_v25 }
 0x386   :  { %v1542_v54 = vpop.f32.mrf.mxu3 }
 0x387   :  { %v1543_v44 = vadd.f32 %v2788_v45, %v1542_v54 }
 0x388   :  { %v1361_v12 = vpop.f32.mrf.mxu2 }
 0x389   :  { %vm1626_vm7 = vcmp.ge.f32.partialorder %v1543_v44, 0.0  ;;  %v1658_v57 = vmul.f32 0.01, %v1543_v44  ;;  %v1362_v13 = vadd.f32 %v1361_v12, %v1248_v31  ;;  %v1272_v20 = vpop.f32.mrf.mxu1 }
 0x38b   :  { %v1690_v6 = vsel %vm1626_vm7, %v1543_v44, %v1658_v57  ;;  %1592 = vmatmul.f32.gmra.mxu3 %v1362_v13 }
 0x38c   :  { %1722 = vst [vmem:[#allocation7 + $0x30] sm:$0xff] %v1690_v6 }
 0x38e   :  { %v1545_v23 = vpop.f32.mrf.mxu3 }
 0x38f   :  { %v1546_v7 = vadd.f32 %v2788_v45, %v1545_v23 }
 0x390   :  { %v1364_v52 = vpop.f32.mrf.mxu2 }
 0x391   :  { %vm1627_vm8 = vcmp.ge.f32.partialorder %v1546_v7, 0.0  ;;  %v1659_v59 = vmul.f32 0.01, %v1546_v7  ;;  %v1365_v10 = vadd.f32 %v1364_v52, %v1251_v21 }
 0x393   :  { %v1691_v41 = vsel %vm1627_vm8, %v1546_v7, %v1659_v59  ;;  %1595 = vmatmul.f32.gmra.mxu3 %v1365_v10 }
 0x394   :  { %1723 = vst [vmem:[#allocation7 + $0x38] sm:$0xff] %v1691_v41 }
 0x396   :  { %v1548_v48 = vpop.f32.mrf.mxu3 }
 0x397   :  { %v1549_v39 = vadd.f32 %v2788_v45, %v1548_v48 }
 0x398   :  { %v1367_v53 = vpop.f32.mrf.mxu2 }
 0x399   :  { %vm1628_vm9 = vcmp.ge.f32.partialorder %v1549_v39, 0.0  ;;  %v1660_v38 = vmul.f32 0.01, %v1549_v39  ;;  %v1368_v29 = vadd.f32 %v1367_v53, %v1254_v34 }
 0x39b   :  { %v1692_v11 = vsel %vm1628_vm9, %v1549_v39, %v1660_v38  ;;  %1598 = vmatmul.f32.gmra.mxu3 %v1368_v29 }
 0x39c   :  { %1724 = vst [vmem:[#allocation7 + $0x40] sm:$0xff] %v1692_v11 }
 0x39e   :  { %v1551_v37 = vpop.f32.mrf.mxu3 }
 0x39f   :  { %v1552_v8 = vadd.f32 %v2788_v45, %v1551_v37 }
 0x3a0   :  { %v1370_v19 = vpop.f32.mrf.mxu2 }
 0x3a1   :  { %vm1629_vm10 = vcmp.ge.f32.partialorder %v1552_v8, 0.0  ;;  %v1661_v15 = vmul.f32 0.01, %v1552_v8  ;;  %v1371_v46 = vadd.f32 %v1370_v19, %v1257_v27 }
 0x3a3   :  { %v1693_v56 = vsel %vm1629_vm10, %v1552_v8, %v1661_v15  ;;  %1601 = vmatmul.f32.gmra.mxu3 %v1371_v46 }
 0x3a4   :  { %1725 = vst [vmem:[#allocation7 + $0x48] sm:$0xff] %v1693_v56 }
 0x3a6   :  { %v1554_v51 = vpop.f32.mrf.mxu3 }
 0x3a7   :  { %v1555_v4 = vadd.f32 %v2788_v45, %v1554_v51 }
 0x3a8   :  { %v1373_v17 = vpop.f32.mrf.mxu2 }
 0x3a9   :  { %vm1630_vm11 = vcmp.ge.f32.partialorder %v1555_v4, 0.0  ;;  %v1662_v33 = vmul.f32 0.01, %v1555_v4  ;;  %v1374_v9 = vadd.f32 %v1373_v17, %v1260_v28 }
 0x3ab   :  { %v1694_v43 = vsel %vm1630_vm11, %v1555_v4, %v1662_v33  ;;  %1604 = vmatmul.f32.gmra.mxu3 %v1374_v9 }
 0x3ac   :  { %1726 = vst [vmem:[#allocation7 + $0x50] sm:$0xff] %v1694_v43 }
 0x3ae   :  { %v1557_v36 = vpop.f32.mrf.mxu3 }
 0x3af   :  { %v1558_v49 = vadd.f32 %v2788_v45, %v1557_v36 }
 0x3b0   :  { %v1376_v55 = vpop.f32.mrf.mxu2 }
 0x3b1   :  { %vm1631_vm12 = vcmp.ge.f32.partialorder %v1558_v49, 0.0  ;;  %v1663_v26 = vmul.f32 0.01, %v1558_v49  ;;  %v1377_v63 = vadd.f32 %v1376_v55, %v1263_v47 }
 0x3b3   :  { %v1695_v40 = vsel %vm1631_vm12, %v1558_v49, %v1663_v26  ;;  %1607 = vmatmul.f32.gmra.mxu3 %v1377_v63 }
 0x3b4   :  { %1727 = vst [vmem:[#allocation7 + $0x58] sm:$0xff] %v1695_v40 }
 0x3b6   :  { %v1560_v22 = vpop.f32.mrf.mxu3 }
 0x3b7   :  { %v1561_v5 = vadd.f32 %v2788_v45, %v1560_v22 }
 0x3b8   :  { %v1379_v14 = vpop.f32.mrf.mxu2 }
 0x3b9   :  { %vm1632_vm13 = vcmp.ge.f32.partialorder %v1561_v5, 0.0  ;;  %v1664_v2 = vmul.f32 0.01, %v1561_v5  ;;  %v1380_v30 = vadd.f32 %v1379_v14, %v1266_v3 }
 0x3bb   :  { %v1696_v61 = vsel %vm1632_vm13, %v1561_v5, %v1664_v2  ;;  %1610 = vmatmul.f32.gmra.mxu3 %v1380_v30 }
 0x3bc   :  { %1728 = vst [vmem:[#allocation7 + $0x60] sm:$0xff] %v1696_v61 }
 0x3be   :  { %v1563_v18 = vpop.f32.mrf.mxu3 }
 0x3bf   :  { %v1564_v32 = vadd.f32 %v2788_v45, %v1563_v18 }
 0x3c0   :  { %v1382_v62 = vpop.f32.mrf.mxu2 }
 0x3c1   :  { %vm1633_vm14 = vcmp.ge.f32.partialorder %v1564_v32, 0.0  ;;  %v1665_v1 = vmul.f32 0.01, %v1564_v32  ;;  %v1383_v60 = vadd.f32 %v1382_v62, %v1269_v24 }
 0x3c3   :  { %v1697_v31 = vsel %vm1633_vm14, %v1564_v32, %v1665_v1  ;;  %1613 = vmatmul.f32.gmra.mxu3 %v1383_v60 }
 0x3c4   :  { %1729 = vst [vmem:[#allocation7 + $0x68] sm:$0xff] %v1697_v31 }
 0x3c6   :  { %v1566_v58 = vpop.f32.mrf.mxu3 }
 0x3c7   :  { %v1567_v16 = vadd.f32 %v2788_v45, %v1566_v58 }
 0x3c8   :  { %v1385_v0 = vpop.f32.mrf.mxu2 }
 0x3c9   :  { %vm1634_vm15 = vcmp.ge.f32.partialorder %v1567_v16, 0.0  ;;  %v1666_v50 = vmul.f32 0.01, %v1567_v16  ;;  %v1386_v35 = vadd.f32 %v1385_v0, %v1272_v20 }
 0x3cb   :  { %v1698_v42 = vsel %vm1634_vm15, %v1567_v16, %v1666_v50  ;;  %1616 = vmatmul.f32.gmra.mxu3 %v1386_v35 }
 0x3cc   :  { %1730 = vst [vmem:[#allocation7 + $0x70] sm:$0xff] %v1698_v42 }
 0x3ce   :  { %v1569_v21 = vpop.f32.mrf.mxu3 }
 0x3cf   :  { %v1570_v25 = vadd.f32 %v2788_v45, %v1569_v21 }
 0x3d1   :  { %vm1635_vm0 = vcmp.ge.f32.partialorder %v1570_v25, 0.0  ;;  %v1667_v54 = vmul.f32 0.01, %v1570_v25 }
 0x3d3   :  { %v1699_v44 = vsel %vm1635_vm0, %v1570_v25, %v1667_v54 }
 0x3d4   :  { %1731 = vst [vmem:[#allocation7 + $0x78] sm:$0xff] %v1699_v44 }
 0x3d6   :  { %v1572_v12 = vpop.f32.mrf.mxu3 }
 0x3d7   :  { %v1573_v57 = vadd.f32 %v2788_v45, %v1572_v12 }
 0x3d9   :  { %vm1636_vm1 = vcmp.ge.f32.partialorder %v1573_v57, 0.0  ;;  %v1668_v13 = vmul.f32 0.01, %v1573_v57 }
 0x3db   :  { %v1700_v6 = vsel %vm1636_vm1, %v1573_v57, %v1668_v13 }
 0x3dc   :  { %1732 = vst [vmem:[#allocation7 + $0x80] sm:$0xff] %v1700_v6 }
 0x3de   :  { %v1575_v34 = vpop.f32.mrf.mxu3 }
 0x3df   :  { %v1576_v23 = vadd.f32 %v2788_v45, %v1575_v34 }
 0x3e1   :  { %vm1637_vm2 = vcmp.ge.f32.partialorder %v1576_v23, 0.0  ;;  %v1669_v7 = vmul.f32 0.01, %v1576_v23 }
 0x3e3   :  { %v1701_v52 = vsel %vm1637_vm2, %v1576_v23, %v1669_v7 }
 0x3e4   :  { %1733 = vst [vmem:[#allocation7 + $0x88] sm:$0xff] %v1701_v52 }
 0x3e6   :  { %v1578_v59 = vpop.f32.mrf.mxu3 }
 0x3e7   :  { %v1579_v10 = vadd.f32 %v2788_v45, %v1578_v59 }
 0x3e9   :  { %vm1638_vm3 = vcmp.ge.f32.partialorder %v1579_v10, 0.0  ;;  %v1670_v41 = vmul.f32 0.01, %v1579_v10 }
 0x3eb   :  { %v1702_v27 = vsel %vm1638_vm3, %v1579_v10, %v1670_v41 }
 0x3ec   :  { %1734 = vst [vmem:[#allocation7 + $0x90] sm:$0xff] %v1702_v27 }
 0x3ee   :  { %v1581_v48 = vpop.f32.mrf.mxu3 }
 0x3ef   :  { %v1582_v39 = vadd.f32 %v2788_v45, %v1581_v48 }
 0x3f1   :  { %vm1639_vm4 = vcmp.ge.f32.partialorder %v1582_v39, 0.0  ;;  %v1671_v53 = vmul.f32 0.01, %v1582_v39 }
 0x3f3   :  { %v1703_v38 = vsel %vm1639_vm4, %v1582_v39, %v1671_v53 }
 0x3f4   :  { %1735 = vst [vmem:[#allocation7 + $0x98] sm:$0xff] %v1703_v38 }
 0x3f6   :  { %v1584_v29 = vpop.f32.mrf.mxu3 }
 0x3f7   :  { %v1585_v11 = vadd.f32 %v2788_v45, %v1584_v29 }
 0x3f9   :  { %vm1640_vm5 = vcmp.ge.f32.partialorder %v1585_v11, 0.0  ;;  %v1672_v37 = vmul.f32 0.01, %v1585_v11 }
 0x3fb   :  { %v1704_v8 = vsel %vm1640_vm5, %v1585_v11, %v1672_v37 }
 0x3fc   :  { %1736 = vst [vmem:[#allocation7 + $0xa0] sm:$0xff] %v1704_v8 }
 0x3fe   :  { %v1587_v28 = vpop.f32.mrf.mxu3 }
 0x3ff   :  { %v1588_v19 = vadd.f32 %v2788_v45, %v1587_v28 }
 0x401   :  { %vm1641_vm6 = vcmp.ge.f32.partialorder %v1588_v19, 0.0  ;;  %v1673_v15 = vmul.f32 0.01, %v1588_v19 }
 0x403   :  { %v1705_v46 = vsel %vm1641_vm6, %v1588_v19, %v1673_v15 }
 0x404   :  { %1737 = vst [vmem:[#allocation7 + $0xa8] sm:$0xff] %v1705_v46 }
 0x406   :  { %v1590_v56 = vpop.f32.mrf.mxu3 }
 0x407   :  { %v1591_v51 = vadd.f32 %v2788_v45, %v1590_v56 }
 0x409   :  { %vm1642_vm7 = vcmp.ge.f32.partialorder %v1591_v51, 0.0  ;;  %v1674_v4 = vmul.f32 0.01, %v1591_v51 }
 0x40b   :  { %v1706_v17 = vsel %vm1642_vm7, %v1591_v51, %v1674_v4 }
 0x40c   :  { %1738 = vst [vmem:[#allocation7 + $0xb0] sm:$0xff] %v1706_v17 }
 0x40e   :  { %v1593_v33 = vpop.f32.mrf.mxu3 }
 0x40f   :  { %v1594_v9 = vadd.f32 %v2788_v45, %v1593_v33 }
 0x411   :  { %vm1643_vm8 = vcmp.ge.f32.partialorder %v1594_v9, 0.0  ;;  %v1675_v47 = vmul.f32 0.01, %v1594_v9 }
 0x413   :  { %v1707_v43 = vsel %vm1643_vm8, %v1594_v9, %v1675_v47 }
 0x414   :  { %1739 = vst [vmem:[#allocation7 + $0xb8] sm:$0xff] %v1707_v43 }
 0x416   :  { %v1596_v36 = vpop.f32.mrf.mxu3 }
 0x417   :  { %v1597_v49 = vadd.f32 %v2788_v45, %v1596_v36 }
 0x419   :  { %vm1644_vm9 = vcmp.ge.f32.partialorder %v1597_v49, 0.0  ;;  %v1676_v55 = vmul.f32 0.01, %v1597_v49 }
 0x41b   :  { %v1708_v26 = vsel %vm1644_vm9, %v1597_v49, %v1676_v55 }
 0x41c   :  { %1740 = vst [vmem:[#allocation7 + $0xc0] sm:$0xff] %v1708_v26 }
 0x41e   :  { %v1599_v63 = vpop.f32.mrf.mxu3 }
 0x41f   :  { %v1600_v40 = vadd.f32 %v2788_v45, %v1599_v63 }
 0x421   :  { %vm1645_vm10 = vcmp.ge.f32.partialorder %v1600_v40, 0.0  ;;  %v1677_v3 = vmul.f32 0.01, %v1600_v40 }
 0x423   :  { %v1709_v22 = vsel %vm1645_vm10, %v1600_v40, %v1677_v3 }
 0x424   :  { %1741 = vst [vmem:[#allocation7 + $0xc8] sm:$0xff] %v1709_v22 }
 0x426   :  { %v1602_v5 = vpop.f32.mrf.mxu3 }
 0x427   :  { %v1603_v14 = vadd.f32 %v2788_v45, %v1602_v5 }
 0x429   :  { %vm1646_vm11 = vcmp.ge.f32.partialorder %v1603_v14, 0.0  ;;  %v1678_v2 = vmul.f32 0.01, %v1603_v14 }
 0x42b   :  { %v1710_v30 = vsel %vm1646_vm11, %v1603_v14, %v1678_v2 }
 0x42c   :  { %1742 = vst [vmem:[#allocation7 + $0xd0] sm:$0xff] %v1710_v30 }
 0x42e   :  { %v1605_v61 = vpop.f32.mrf.mxu3 }
 0x42f   :  { %v1606_v24 = vadd.f32 %v2788_v45, %v1605_v61 }
 0x431   :  { %vm1647_vm12 = vcmp.ge.f32.partialorder %v1606_v24, 0.0  ;;  %v1679_v18 = vmul.f32 0.01, %v1606_v24 }
 0x433   :  { %v1711_v32 = vsel %vm1647_vm12, %v1606_v24, %v1679_v18 }
 0x434   :  { %1743 = vst [vmem:[#allocation7 + $0xd8] sm:$0xff] %v1711_v32 }
 0x436   :  { %v1608_v62 = vpop.f32.mrf.mxu3 }
 0x437   :  { %v1609_v1 = vadd.f32 %v2788_v45, %v1608_v62 }
 0x439   :  { %vm1648_vm13 = vcmp.ge.f32.partialorder %v1609_v1, 0.0  ;;  %v1680_v60 = vmul.f32 0.01, %v1609_v1 }
 0x43b   :  { %v1712_v31 = vsel %vm1648_vm13, %v1609_v1, %v1680_v60 }
 0x43c   :  { %1744 = vst [vmem:[#allocation7 + $0xe0] sm:$0xff] %v1712_v31 }
 0x43e   :  { %v1611_v58 = vpop.f32.mrf.mxu3 }
 0x43f   :  { %v1612_v16 = vadd.f32 %v2788_v45, %v1611_v58 }
 0x441   :  { %vm1649_vm14 = vcmp.ge.f32.partialorder %v1612_v16, 0.0  ;;  %v1681_v20 = vmul.f32 0.01, %v1612_v16 }
 0x443   :  { %v1713_v0 = vsel %vm1649_vm14, %v1612_v16, %v1681_v20 }
 0x444   :  { %1745 = vst [vmem:[#allocation7 + $0xe8] sm:$0xff] %v1713_v0 }
 0x446   :  { %v1614_v50 = vpop.f32.mrf.mxu3 }
 0x447   :  { %v1615_v35 = vadd.f32 %v2788_v45, %v1614_v50 }
 0x449   :  { %vm1650_vm15 = vcmp.ge.f32.partialorder %v1615_v35, 0.0  ;;  %v1682_v42 = vmul.f32 0.01, %v1615_v35 }
 0x44b   :  { %v1714_v21 = vsel %vm1650_vm15, %v1615_v35, %v1682_v42 }
 0x44c   :  { %1746 = vst [vmem:[#allocation7 + $0xf0] sm:$0xff] %v1714_v21 }
 0x44e   :  { %v1617_v25 = vpop.f32.mrf.mxu3 }
 0x44f   :  { %v1618_v54 = vadd.f32 %v2788_v45, %v1617_v25 }
 0x451   :  { %vm1651_vm0 = vcmp.ge.f32.partialorder %v1618_v54, 0.0  ;;  %v1683_v44 = vmul.f32 0.01, %v1618_v54 }
 0x453   :  { %v1715_v12 = vsel %vm1651_vm0, %v1618_v54, %v1683_v44 }
 0x454   :  { %1747 = vst [vmem:[#allocation7 + $0xf8] sm:$0xff] %v1715_v12 }
 0x455   :  { %1760 = dma.vmem_to_hbm [thread:$0]  %s1753_s20, 4096, %s1755_s23, [#allocation6], %s1953_s24, %s1953_s24, %s1954_s25  }
 0x456   :  { %1947 = dma.done.wait [#allocation6], 4096  }
 0x457   :  { %1948 = vsyncadd [#allocation6], 4294963200 }
 0x458   :  { %1765 = vsyncpa [#allocation5], 1 }
 0x459   :  { %1766 = vsyncpa [#allocation6], 1 }

</bundles_post_ra>
